<compile_context>
chip_gen: v6e
topology: v6e:2x2x1
jax: 0.10.0
libtpu: 0.0.40
codegen_flags: <defaults>
</compile_context>

<pallas_src>
import functools

import jax
import jax.numpy as jnp
import numpy as np
from jax.experimental import pallas as pl
from jax.experimental.pallas import tpu as pltpu

N_STATES = 26
OUT_PAD = 128          # lane-dense logits width (multiple of 128 >= N_STATES)
SUBLANE = 8            # f32 sublane tile


# ----------------------------------------------------------------------------
# Single fused Pallas kernel: (embedding+layer0 proj) + LSTM layers + linear.
# ----------------------------------------------------------------------------
def _fused_rnn_kernel(seq_len, batch, hidden, num_layers, *refs):
    # refs = [ids,
    #         (w_in, w_hh_t, b) * num_layers,    # layer 0's w_in = E @ W_ih0
    #         lin_w_pad, lin_b_pad,
    #         out]
    ids_ref = refs[0]
    layer_refs = refs[1:1 + 3 * num_layers]
    wlin_ref = refs[1 + 3 * num_layers]
    blin_ref = refs[2 + 3 * num_layers]
    out_ref = refs[3 + 3 * num_layers]

    sb = seq_len * batch

    # Embedding folded into layer 0: layer 0's "input" is the one-hot matrix
    # and its input-side weight is E @ W_ih0 (26, 4H), so the gather costs
    # nothing beyond the per-layer projection matmul we do anyway.
    lane_ids = jax.lax.broadcasted_iota(jnp.int32, (sb, N_STATES), 1)
    cur = (ids_ref[...] == lane_ids).astype(jnp.float32)          # (sb, 26)

    for l in range(num_layers):
        win_ref, whh_ref, b_ref = layer_refs[3 * l:3 * l + 3]
        # Input-side projection + bias for ALL time steps in one batched
        # matmul (hoisted out of the recurrence) -- only the small h @ W_hh
        # dot remains on the serial path.
        xp = (jnp.dot(cur, win_ref[...], preferred_element_type=jnp.float32)
              + b_ref[...])                                       # (sb, 4H)
        whh = whh_ref[...]                                        # (H, 4H)
        h = jnp.zeros((batch, hidden), jnp.float32)
        c = jnp.zeros((batch, hidden), jnp.float32)
        hs = []
        # Statically unrolled time loop (seq_len is small); h/c and the
        # per-step outputs live entirely in vregs -- no scratch round trip.
        # TODO(synk): for seq_len beyond a few dozen steps switch to
        # lax.fori_loop(..., unroll=8) with a chunked h writeback.
        for t in range(seq_len):
            # batch == 8  =>  this slice is exactly one (8, 128) vreg tile.
            # (precision=HIGHEST on this recurrent dot would tighten f32
            # parity with PyTorch; default MXU precision is within tolerance.)
            gates = xp[t * batch:(t + 1) * batch, :] + jnp.dot(
                h, whh, preferred_element_type=jnp.float32)
            # Full-width nonlinearities: 2 EUP pushes per step instead of 4
            # sub-vreg ones; PyTorch gate order is i, f, g, o.
            sig = jax.nn.sigmoid(gates)
            tnh = jnp.tanh(gates)
            i_g = sig[:, 0 * hidden:1 * hidden]
            f_g = sig[:, 1 * hidden:2 * hidden]
            g_g = tnh[:, 2 * hidden:3 * hidden]
            o_g = sig[:, 3 * hidden:4 * hidden]
            c = f_g * c + i_g * g_g
            h = o_g * jnp.tanh(c)
            hs.append(h)
        cur = jnp.concatenate(hs, axis=0)                         # (sb, H)

    # Final linear over the whole sequence, lane-dense (128-wide) store.
    out_ref[...] = (jnp.dot(cur, wlin_ref[...],
                            preferred_element_type=jnp.float32)
                    + blin_ref[...])


# ----------------------------------------------------------------------------
# Wrapper: one pallas_call for the entire network.
# ----------------------------------------------------------------------------
def rnn_forward(params, x_ids):
    seq_len, batch = x_ids.shape
    hidden = params["lstm"][0]["w_hh_t"].shape[0]
    num_layers = len(params["lstm"])

    # Pad batch to a whole sublane tile so every per-step operand on the
    # serial recurrent path is a full (8, 128) vreg tile; padded rows use
    # token id 0 and are sliced off after the call.
    batch_pad = ((batch + SUBLANE - 1) // SUBLANE) * SUBLANE
    sb = seq_len * batch_pad
    ids = jnp.zeros((seq_len, batch_pad), jnp.int32)
    ids = ids.at[:, :batch].set(x_ids.astype(jnp.int32))
    ids2d = ids.reshape(sb, 1)

    flat = [ids2d]
    for layer in params["lstm"]:
        flat += [layer["w_in"], layer["w_hh_t"], layer["b"]]
    flat += [params["lin_w_t_pad"], params["lin_b_pad"]]

    kernel = functools.partial(_fused_rnn_kernel, seq_len, batch_pad, hidden,
                               num_layers)
    # Everything (ids, weights, per-layer xp, output) fits easily in VMEM at
    # these shapes, so a single grid-less call is used.  At much larger
    # seq_len*batch this would need a time/batch grid ("arbitrary"/"parallel"
    # semantics, h/c carried in VMEM scratch), bf16 weights, and a
    # vmem_limit_bytes override (v7x: 64 MiB VMEM vs 128 MiB on v5e/v6e).
    out_pad = pl.pallas_call(
        kernel,
        out_shape=jax.ShapeDtypeStruct((sb, OUT_PAD), jnp.float32),
        in_specs=[pl.BlockSpec(memory_space=pltpu.MemorySpace.VMEM)] * len(flat),
        out_specs=pl.BlockSpec(memory_space=pltpu.MemorySpace.VMEM),
    )(*flat)
    # Slice padded lanes / padded batch rows back outside the kernel.
    out = out_pad[:, :N_STATES].reshape(seq_len, batch_pad, N_STATES)
    return out[:, :batch, :]


# ----------------------------------------------------------------------------
# Parameter init matching PyTorch defaults (Embedding ~ N(0,1); LSTM/Linear
# ~ U(-1/sqrt(H), 1/sqrt(H))).  Weights pre-transposed; layer-0 input weight
# fused with the embedding table; linear head padded to 128 output lanes.
# ----------------------------------------------------------------------------
def init_params(key, input_size, hidden_size, num_layers=2):
    keys = jax.random.split(key, 3 + 4 * num_layers)
    k = 1.0 / np.sqrt(hidden_size)
    params = {}
    params["embedding"] = jax.random.normal(keys[0], (N_STATES, input_size),
                                            jnp.float32)
    layers = []
    for l in range(num_layers):
        in_dim = input_size if l == 0 else hidden_size
        kw = keys[3 + 4 * l: 3 + 4 * (l + 1)]
        w_ih = jax.random.uniform(kw[0], (4 * hidden_size, in_dim),
                                  jnp.float32, -k, k)
        w_hh = jax.random.uniform(kw[1], (4 * hidden_size, hidden_size),
                                  jnp.float32, -k, k)
        b_ih = jax.random.uniform(kw[2], (4 * hidden_size,), jnp.float32, -k, k)
        b_hh = jax.random.uniform(kw[3], (4 * hidden_size,), jnp.float32, -k, k)
        layer = {
            "w_ih_t": w_ih.T,                       # (in_dim, 4H)  (reference)
            "w_hh_t": w_hh.T,                       # (H, 4H)
            "b": (b_ih + b_hh)[None, :],            # (1, 4H)
        }
        # Kernel-side input projection weight; layer 0's is fused with the
        # embedding table so the kernel never materializes x_emb.
        if l == 0:
            layer["w_in"] = params["embedding"] @ layer["w_ih_t"]   # (26, 4H)
        else:
            layer["w_in"] = layer["w_ih_t"]                         # (H, 4H)
        layers.append(layer)
    params["lstm"] = layers
    lin_w = jax.random.uniform(keys[1], (N_STATES, hidden_size),
                               jnp.float32, -k, k)
    lin_b = jax.random.uniform(keys[2], (N_STATES,), jnp.float32, -k, k)
    params["lin_w_t"] = lin_w.T                     # (H, 26)   for reference
    params["lin_b"] = lin_b[None, :]                # (1, 26)   for reference
    params["lin_w_t_pad"] = (jnp.zeros((hidden_size, OUT_PAD), jnp.float32)
                             .at[:, :N_STATES].set(lin_w.T))
    params["lin_b_pad"] = (jnp.zeros((1, OUT_PAD), jnp.float32)
                           .at[:, :N_STATES].set(lin_b[None, :]))
    return params


# Pure-JAX reference (same math) for a silent sanity check.
def rnn_forward_ref(params, x_ids):
    h_seq = params["embedding"][x_ids].astype(jnp.float32)
    for layer in params["lstm"]:
        seq_len, batch, _ = h_seq.shape
        hidden = layer["w_hh_t"].shape[0]
        h = jnp.zeros((batch, hidden), jnp.float32)
        c = jnp.zeros((batch, hidden), jnp.float32)
        outs = []
        for t in range(seq_len):
            gates = (h_seq[t] @ layer["w_ih_t"] + h @ layer["w_hh_t"]
                     + layer["b"])
            i_g = jax.nn.sigmoid(gates[:, 0 * hidden:1 * hidden])
            f_g = jax.nn.sigmoid(gates[:, 1 * hidden:2 * hidden])
            g_g = jnp.tanh(gates[:, 2 * hidden:3 * hidden])
            o_g = jax.nn.sigmoid(gates[:, 3 * hidden:4 * hidden])
            c = f_g * c + i_g * g_g
            h = o_g * jnp.tanh(c)
            outs.append(h)
        h_seq = jnp.stack(outs, axis=0)
    return h_seq @ params["lin_w_t"] + params["lin_b"]


if __name__ == "__main__":
    SEQ_LEN, BATCH = 8, 4
    INPUT_SIZE, HIDDEN_SIZE, NUM_LAYERS = 16, 32, 2

    key = jax.random.PRNGKey(0)
    k_param, k_data = jax.random.split(key)
    params = init_params(k_param, INPUT_SIZE, HIDDEN_SIZE, NUM_LAYERS)
    x_ids = jax.random.randint(k_data, (SEQ_LEN, BATCH), 0, N_STATES,
                               dtype=jnp.int32)

    logits = jax.block_until_ready(rnn_forward(params, x_ids))
    ref = jax.block_until_ready(rnn_forward_ref(params, x_ids))

    assert logits.shape == (SEQ_LEN, BATCH, N_STATES)
    np.testing.assert_allclose(np.asarray(logits), np.asarray(ref),
                               rtol=2e-2, atol=2e-2)
    print("KERNEL_OK")
</pallas_src>

<mosaic_0001>
module attributes {stable_mosaic.version = 11 : i64} {
  func.func @_fused_rnn_kernel(%arg0: memref<64x1xi32, #tpu.memory_space<vmem>>, %arg1: memref<26x128xf32, #tpu.memory_space<vmem>>, %arg2: memref<32x128xf32, #tpu.memory_space<vmem>>, %arg3: memref<1x128xf32, #tpu.memory_space<vmem>>, %arg4: memref<32x128xf32, #tpu.memory_space<vmem>>, %arg5: memref<32x128xf32, #tpu.memory_space<vmem>>, %arg6: memref<1x128xf32, #tpu.memory_space<vmem>>, %arg7: memref<32x128xf32, #tpu.memory_space<vmem>>, %arg8: memref<1x128xf32, #tpu.memory_space<vmem>>, %arg9: memref<64x128xf32, #tpu.memory_space<vmem>>) attributes {dimension_semantics = [], scalar_prefetch = 0 : i64, scratch_operands = 0 : i64, tpu.core_type = #tpu.core_type<tc>} {
    %0 = tpu.iota {dimensions = array<i32: 1>} : vector<64x26xi32>
    %c0 = arith.constant 0 : index
    %c0_0 = arith.constant 0 : index
    %1 = vector.load %arg0[%c0, %c0_0] : memref<64x1xi32, #tpu.memory_space<vmem>>, vector<64x1xi32>
    %2 = vector.broadcast %1 : vector<64x1xi32> to vector<64x26xi32>
    %3 = arith.cmpi eq, %2, %0 : vector<64x26xi32>
    %4 = arith.extui %3 : vector<64x26xi1> to vector<64x26xi32>
    %5 = arith.sitofp %4 : vector<64x26xi32> to vector<64x26xf32>
    %c0_1 = arith.constant 0 : index
    %c0_2 = arith.constant 0 : index
    %6 = vector.load %arg1[%c0_1, %c0_2] : memref<26x128xf32, #tpu.memory_space<vmem>>, vector<26x128xf32>
    %cst = arith.constant dense<0.000000e+00> : vector<64x128xf32>
    %7 = tpu.matmul %5, %6, %cst {dimension_numbers = #tpu.dot_dimension_numbers<[1], [0], [0], [1], [0, 0, 1, 1], [], []>} : vector<64x26xf32>, vector<26x128xf32>, vector<64x128xf32> -> vector<64x128xf32>
    %c0_3 = arith.constant 0 : index
    %c0_4 = arith.constant 0 : index
    %8 = vector.load %arg3[%c0_3, %c0_4] : memref<1x128xf32, #tpu.memory_space<vmem>>, vector<1x128xf32>
    %9 = vector.broadcast %8 : vector<1x128xf32> to vector<64x128xf32>
    %10 = arith.addf %7, %9 : vector<64x128xf32>
    %c0_5 = arith.constant 0 : index
    %c0_6 = arith.constant 0 : index
    %11 = vector.load %arg2[%c0_5, %c0_6] : memref<32x128xf32, #tpu.memory_space<vmem>>, vector<32x128xf32>
    %cst_7 = arith.constant 0.000000e+00 : f32
    %12 = vector.broadcast %cst_7 : f32 to vector<8x32xf32>
    %cst_8 = arith.constant 0.000000e+00 : f32
    %13 = vector.broadcast %cst_8 : f32 to vector<8x32xf32>
    %14 = vector.extract_strided_slice %10 {offsets = [0, 0], sizes = [8, 128], strides = [1, 1]} : vector<64x128xf32> to vector<8x128xf32>
    %cst_9 = arith.constant dense<0.000000e+00> : vector<8x128xf32>
    %15 = tpu.matmul %12, %11, %cst_9 {dimension_numbers = #tpu.dot_dimension_numbers<[1], [0], [0], [1], [0, 0, 1, 1], [], []>} : vector<8x32xf32>, vector<32x128xf32>, vector<8x128xf32> -> vector<8x128xf32>
    %16 = arith.addf %14, %15 : vector<8x128xf32>
    %17 = arith.negf %16 : vector<8x128xf32>
    %18 = math.exp %17 : vector<8x128xf32>
    %cst_10 = arith.constant 1.000000e+00 : f32
    %19 = vector.broadcast %cst_10 : f32 to vector<8x128xf32>
    %20 = arith.addf %19, %18 : vector<8x128xf32>
    %21 = arith.divf %19, %20 : vector<8x128xf32>
    %22 = math.tanh %16 : vector<8x128xf32>
    %23 = vector.extract_strided_slice %21 {offsets = [0, 0], sizes = [8, 32], strides = [1, 1]} : vector<8x128xf32> to vector<8x32xf32>
    %24 = vector.extract_strided_slice %21 {offsets = [0, 32], sizes = [8, 32], strides = [1, 1]} : vector<8x128xf32> to vector<8x32xf32>
    %25 = vector.extract_strided_slice %22 {offsets = [0, 64], sizes = [8, 32], strides = [1, 1]} : vector<8x128xf32> to vector<8x32xf32>
    %26 = vector.extract_strided_slice %21 {offsets = [0, 96], sizes = [8, 32], strides = [1, 1]} : vector<8x128xf32> to vector<8x32xf32>
    %27 = arith.mulf %24, %13 : vector<8x32xf32>
    %28 = arith.mulf %23, %25 : vector<8x32xf32>
    %29 = arith.addf %27, %28 : vector<8x32xf32>
    %30 = math.tanh %29 : vector<8x32xf32>
    %31 = arith.mulf %26, %30 : vector<8x32xf32>
    %32 = vector.extract_strided_slice %10 {offsets = [8, 0], sizes = [8, 128], strides = [1, 1]} : vector<64x128xf32> to vector<8x128xf32>
    %cst_11 = arith.constant dense<0.000000e+00> : vector<8x128xf32>
    %33 = tpu.matmul %31, %11, %cst_11 {dimension_numbers = #tpu.dot_dimension_numbers<[1], [0], [0], [1], [0, 0, 1, 1], [], []>} : vector<8x32xf32>, vector<32x128xf32>, vector<8x128xf32> -> vector<8x128xf32>
    %34 = arith.addf %32, %33 : vector<8x128xf32>
    %35 = arith.negf %34 : vector<8x128xf32>
    %36 = math.exp %35 : vector<8x128xf32>
    %cst_12 = arith.constant 1.000000e+00 : f32
    %37 = vector.broadcast %cst_12 : f32 to vector<8x128xf32>
    %38 = arith.addf %37, %36 : vector<8x128xf32>
    %39 = arith.divf %37, %38 : vector<8x128xf32>
    %40 = math.tanh %34 : vector<8x128xf32>
    %41 = vector.extract_strided_slice %39 {offsets = [0, 0], sizes = [8, 32], strides = [1, 1]} : vector<8x128xf32> to vector<8x32xf32>
    %42 = vector.extract_strided_slice %39 {offsets = [0, 32], sizes = [8, 32], strides = [1, 1]} : vector<8x128xf32> to vector<8x32xf32>
    %43 = vector.extract_strided_slice %40 {offsets = [0, 64], sizes = [8, 32], strides = [1, 1]} : vector<8x128xf32> to vector<8x32xf32>
    %44 = vector.extract_strided_slice %39 {offsets = [0, 96], sizes = [8, 32], strides = [1, 1]} : vector<8x128xf32> to vector<8x32xf32>
    %45 = arith.mulf %42, %29 : vector<8x32xf32>
    %46 = arith.mulf %41, %43 : vector<8x32xf32>
    %47 = arith.addf %45, %46 : vector<8x32xf32>
    %48 = math.tanh %47 : vector<8x32xf32>
    %49 = arith.mulf %44, %48 : vector<8x32xf32>
    %50 = vector.extract_strided_slice %10 {offsets = [16, 0], sizes = [8, 128], strides = [1, 1]} : vector<64x128xf32> to vector<8x128xf32>
    %cst_13 = arith.constant dense<0.000000e+00> : vector<8x128xf32>
    %51 = tpu.matmul %49, %11, %cst_13 {dimension_numbers = #tpu.dot_dimension_numbers<[1], [0], [0], [1], [0, 0, 1, 1], [], []>} : vector<8x32xf32>, vector<32x128xf32>, vector<8x128xf32> -> vector<8x128xf32>
    %52 = arith.addf %50, %51 : vector<8x128xf32>
    %53 = arith.negf %52 : vector<8x128xf32>
    %54 = math.exp %53 : vector<8x128xf32>
    %cst_14 = arith.constant 1.000000e+00 : f32
    %55 = vector.broadcast %cst_14 : f32 to vector<8x128xf32>
    %56 = arith.addf %55, %54 : vector<8x128xf32>
    %57 = arith.divf %55, %56 : vector<8x128xf32>
    %58 = math.tanh %52 : vector<8x128xf32>
    %59 = vector.extract_strided_slice %57 {offsets = [0, 0], sizes = [8, 32], strides = [1, 1]} : vector<8x128xf32> to vector<8x32xf32>
    %60 = vector.extract_strided_slice %57 {offsets = [0, 32], sizes = [8, 32], strides = [1, 1]} : vector<8x128xf32> to vector<8x32xf32>
    %61 = vector.extract_strided_slice %58 {offsets = [0, 64], sizes = [8, 32], strides = [1, 1]} : vector<8x128xf32> to vector<8x32xf32>
    %62 = vector.extract_strided_slice %57 {offsets = [0, 96], sizes = [8, 32], strides = [1, 1]} : vector<8x128xf32> to vector<8x32xf32>
    %63 = arith.mulf %60, %47 : vector<8x32xf32>
    %64 = arith.mulf %59, %61 : vector<8x32xf32>
    %65 = arith.addf %63, %64 : vector<8x32xf32>
    %66 = math.tanh %65 : vector<8x32xf32>
    %67 = arith.mulf %62, %66 : vector<8x32xf32>
    %68 = vector.extract_strided_slice %10 {offsets = [24, 0], sizes = [8, 128], strides = [1, 1]} : vector<64x128xf32> to vector<8x128xf32>
    %cst_15 = arith.constant dense<0.000000e+00> : vector<8x128xf32>
    %69 = tpu.matmul %67, %11, %cst_15 {dimension_numbers = #tpu.dot_dimension_numbers<[1], [0], [0], [1], [0, 0, 1, 1], [], []>} : vector<8x32xf32>, vector<32x128xf32>, vector<8x128xf32> -> vector<8x128xf32>
    %70 = arith.addf %68, %69 : vector<8x128xf32>
    %71 = arith.negf %70 : vector<8x128xf32>
    %72 = math.exp %71 : vector<8x128xf32>
    %cst_16 = arith.constant 1.000000e+00 : f32
    %73 = vector.broadcast %cst_16 : f32 to vector<8x128xf32>
    %74 = arith.addf %73, %72 : vector<8x128xf32>
    %75 = arith.divf %73, %74 : vector<8x128xf32>
    %76 = math.tanh %70 : vector<8x128xf32>
    %77 = vector.extract_strided_slice %75 {offsets = [0, 0], sizes = [8, 32], strides = [1, 1]} : vector<8x128xf32> to vector<8x32xf32>
    %78 = vector.extract_strided_slice %75 {offsets = [0, 32], sizes = [8, 32], strides = [1, 1]} : vector<8x128xf32> to vector<8x32xf32>
    %79 = vector.extract_strided_slice %76 {offsets = [0, 64], sizes = [8, 32], strides = [1, 1]} : vector<8x128xf32> to vector<8x32xf32>
    %80 = vector.extract_strided_slice %75 {offsets = [0, 96], sizes = [8, 32], strides = [1, 1]} : vector<8x128xf32> to vector<8x32xf32>
    %81 = arith.mulf %78, %65 : vector<8x32xf32>
    %82 = arith.mulf %77, %79 : vector<8x32xf32>
    %83 = arith.addf %81, %82 : vector<8x32xf32>
    %84 = math.tanh %83 : vector<8x32xf32>
    %85 = arith.mulf %80, %84 : vector<8x32xf32>
    %86 = vector.extract_strided_slice %10 {offsets = [32, 0], sizes = [8, 128], strides = [1, 1]} : vector<64x128xf32> to vector<8x128xf32>
    %cst_17 = arith.constant dense<0.000000e+00> : vector<8x128xf32>
    %87 = tpu.matmul %85, %11, %cst_17 {dimension_numbers = #tpu.dot_dimension_numbers<[1], [0], [0], [1], [0, 0, 1, 1], [], []>} : vector<8x32xf32>, vector<32x128xf32>, vector<8x128xf32> -> vector<8x128xf32>
    %88 = arith.addf %86, %87 : vector<8x128xf32>
    %89 = arith.negf %88 : vector<8x128xf32>
    %90 = math.exp %89 : vector<8x128xf32>
    %cst_18 = arith.constant 1.000000e+00 : f32
    %91 = vector.broadcast %cst_18 : f32 to vector<8x128xf32>
    %92 = arith.addf %91, %90 : vector<8x128xf32>
    %93 = arith.divf %91, %92 : vector<8x128xf32>
    %94 = math.tanh %88 : vector<8x128xf32>
    %95 = vector.extract_strided_slice %93 {offsets = [0, 0], sizes = [8, 32], strides = [1, 1]} : vector<8x128xf32> to vector<8x32xf32>
    %96 = vector.extract_strided_slice %93 {offsets = [0, 32], sizes = [8, 32], strides = [1, 1]} : vector<8x128xf32> to vector<8x32xf32>
    %97 = vector.extract_strided_slice %94 {offsets = [0, 64], sizes = [8, 32], strides = [1, 1]} : vector<8x128xf32> to vector<8x32xf32>
    %98 = vector.extract_strided_slice %93 {offsets = [0, 96], sizes = [8, 32], strides = [1, 1]} : vector<8x128xf32> to vector<8x32xf32>
    %99 = arith.mulf %96, %83 : vector<8x32xf32>
    %100 = arith.mulf %95, %97 : vector<8x32xf32>
    %101 = arith.addf %99, %100 : vector<8x32xf32>
    %102 = math.tanh %101 : vector<8x32xf32>
    %103 = arith.mulf %98, %102 : vector<8x32xf32>
    %104 = vector.extract_strided_slice %10 {offsets = [40, 0], sizes = [8, 128], strides = [1, 1]} : vector<64x128xf32> to vector<8x128xf32>
    %cst_19 = arith.constant dense<0.000000e+00> : vector<8x128xf32>
    %105 = tpu.matmul %103, %11, %cst_19 {dimension_numbers = #tpu.dot_dimension_numbers<[1], [0], [0], [1], [0, 0, 1, 1], [], []>} : vector<8x32xf32>, vector<32x128xf32>, vector<8x128xf32> -> vector<8x128xf32>
    %106 = arith.addf %104, %105 : vector<8x128xf32>
    %107 = arith.negf %106 : vector<8x128xf32>
    %108 = math.exp %107 : vector<8x128xf32>
    %cst_20 = arith.constant 1.000000e+00 : f32
    %109 = vector.broadcast %cst_20 : f32 to vector<8x128xf32>
    %110 = arith.addf %109, %108 : vector<8x128xf32>
    %111 = arith.divf %109, %110 : vector<8x128xf32>
    %112 = math.tanh %106 : vector<8x128xf32>
    %113 = vector.extract_strided_slice %111 {offsets = [0, 0], sizes = [8, 32], strides = [1, 1]} : vector<8x128xf32> to vector<8x32xf32>
    %114 = vector.extract_strided_slice %111 {offsets = [0, 32], sizes = [8, 32], strides = [1, 1]} : vector<8x128xf32> to vector<8x32xf32>
    %115 = vector.extract_strided_slice %112 {offsets = [0, 64], sizes = [8, 32], strides = [1, 1]} : vector<8x128xf32> to vector<8x32xf32>
    %116 = vector.extract_strided_slice %111 {offsets = [0, 96], sizes = [8, 32], strides = [1, 1]} : vector<8x128xf32> to vector<8x32xf32>
    %117 = arith.mulf %114, %101 : vector<8x32xf32>
    %118 = arith.mulf %113, %115 : vector<8x32xf32>
    %119 = arith.addf %117, %118 : vector<8x32xf32>
    %120 = math.tanh %119 : vector<8x32xf32>
    %121 = arith.mulf %116, %120 : vector<8x32xf32>
    %122 = vector.extract_strided_slice %10 {offsets = [48, 0], sizes = [8, 128], strides = [1, 1]} : vector<64x128xf32> to vector<8x128xf32>
    %cst_21 = arith.constant dense<0.000000e+00> : vector<8x128xf32>
    %123 = tpu.matmul %121, %11, %cst_21 {dimension_numbers = #tpu.dot_dimension_numbers<[1], [0], [0], [1], [0, 0, 1, 1], [], []>} : vector<8x32xf32>, vector<32x128xf32>, vector<8x128xf32> -> vector<8x128xf32>
    %124 = arith.addf %122, %123 : vector<8x128xf32>
    %125 = arith.negf %124 : vector<8x128xf32>
    %126 = math.exp %125 : vector<8x128xf32>
    %cst_22 = arith.constant 1.000000e+00 : f32
    %127 = vector.broadcast %cst_22 : f32 to vector<8x128xf32>
    %128 = arith.addf %127, %126 : vector<8x128xf32>
    %129 = arith.divf %127, %128 : vector<8x128xf32>
    %130 = math.tanh %124 : vector<8x128xf32>
    %131 = vector.extract_strided_slice %129 {offsets = [0, 0], sizes = [8, 32], strides = [1, 1]} : vector<8x128xf32> to vector<8x32xf32>
    %132 = vector.extract_strided_slice %129 {offsets = [0, 32], sizes = [8, 32], strides = [1, 1]} : vector<8x128xf32> to vector<8x32xf32>
    %133 = vector.extract_strided_slice %130 {offsets = [0, 64], sizes = [8, 32], strides = [1, 1]} : vector<8x128xf32> to vector<8x32xf32>
    %134 = vector.extract_strided_slice %129 {offsets = [0, 96], sizes = [8, 32], strides = [1, 1]} : vector<8x128xf32> to vector<8x32xf32>
    %135 = arith.mulf %132, %119 : vector<8x32xf32>
    %136 = arith.mulf %131, %133 : vector<8x32xf32>
    %137 = arith.addf %135, %136 : vector<8x32xf32>
    %138 = math.tanh %137 : vector<8x32xf32>
    %139 = arith.mulf %134, %138 : vector<8x32xf32>
    %140 = vector.extract_strided_slice %10 {offsets = [56, 0], sizes = [8, 128], strides = [1, 1]} : vector<64x128xf32> to vector<8x128xf32>
    %cst_23 = arith.constant dense<0.000000e+00> : vector<8x128xf32>
    %141 = tpu.matmul %139, %11, %cst_23 {dimension_numbers = #tpu.dot_dimension_numbers<[1], [0], [0], [1], [0, 0, 1, 1], [], []>} : vector<8x32xf32>, vector<32x128xf32>, vector<8x128xf32> -> vector<8x128xf32>
    %142 = arith.addf %140, %141 : vector<8x128xf32>
    %143 = arith.negf %142 : vector<8x128xf32>
    %144 = math.exp %143 : vector<8x128xf32>
    %cst_24 = arith.constant 1.000000e+00 : f32
    %145 = vector.broadcast %cst_24 : f32 to vector<8x128xf32>
    %146 = arith.addf %145, %144 : vector<8x128xf32>
    %147 = arith.divf %145, %146 : vector<8x128xf32>
    %148 = math.tanh %142 : vector<8x128xf32>
    %149 = vector.extract_strided_slice %147 {offsets = [0, 0], sizes = [8, 32], strides = [1, 1]} : vector<8x128xf32> to vector<8x32xf32>
    %150 = vector.extract_strided_slice %147 {offsets = [0, 32], sizes = [8, 32], strides = [1, 1]} : vector<8x128xf32> to vector<8x32xf32>
    %151 = vector.extract_strided_slice %148 {offsets = [0, 64], sizes = [8, 32], strides = [1, 1]} : vector<8x128xf32> to vector<8x32xf32>
    %152 = vector.extract_strided_slice %147 {offsets = [0, 96], sizes = [8, 32], strides = [1, 1]} : vector<8x128xf32> to vector<8x32xf32>
    %153 = arith.mulf %150, %137 : vector<8x32xf32>
    %154 = arith.mulf %149, %151 : vector<8x32xf32>
    %155 = arith.addf %153, %154 : vector<8x32xf32>
    %156 = math.tanh %155 : vector<8x32xf32>
    %157 = arith.mulf %152, %156 : vector<8x32xf32>
    %158 = tpu.concatenate %31, %49, %67, %85, %103, %121, %139, %157 in 0 : vector<8x32xf32>, vector<8x32xf32>, vector<8x32xf32>, vector<8x32xf32>, vector<8x32xf32>, vector<8x32xf32>, vector<8x32xf32>, vector<8x32xf32> -> vector<64x32xf32>
    %c0_25 = arith.constant 0 : index
    %c0_26 = arith.constant 0 : index
    %159 = vector.load %arg4[%c0_25, %c0_26] : memref<32x128xf32, #tpu.memory_space<vmem>>, vector<32x128xf32>
    %cst_27 = arith.constant dense<0.000000e+00> : vector<64x128xf32>
    %160 = tpu.matmul %158, %159, %cst_27 {dimension_numbers = #tpu.dot_dimension_numbers<[1], [0], [0], [1], [0, 0, 1, 1], [], []>} : vector<64x32xf32>, vector<32x128xf32>, vector<64x128xf32> -> vector<64x128xf32>
    %c0_28 = arith.constant 0 : index
    %c0_29 = arith.constant 0 : index
    %161 = vector.load %arg6[%c0_28, %c0_29] : memref<1x128xf32, #tpu.memory_space<vmem>>, vector<1x128xf32>
    %162 = vector.broadcast %161 : vector<1x128xf32> to vector<64x128xf32>
    %163 = arith.addf %160, %162 : vector<64x128xf32>
    %c0_30 = arith.constant 0 : index
    %c0_31 = arith.constant 0 : index
    %164 = vector.load %arg5[%c0_30, %c0_31] : memref<32x128xf32, #tpu.memory_space<vmem>>, vector<32x128xf32>
    %cst_32 = arith.constant 0.000000e+00 : f32
    %165 = vector.broadcast %cst_32 : f32 to vector<8x32xf32>
    %cst_33 = arith.constant 0.000000e+00 : f32
    %166 = vector.broadcast %cst_33 : f32 to vector<8x32xf32>
    %167 = vector.extract_strided_slice %163 {offsets = [0, 0], sizes = [8, 128], strides = [1, 1]} : vector<64x128xf32> to vector<8x128xf32>
    %cst_34 = arith.constant dense<0.000000e+00> : vector<8x128xf32>
    %168 = tpu.matmul %165, %164, %cst_34 {dimension_numbers = #tpu.dot_dimension_numbers<[1], [0], [0], [1], [0, 0, 1, 1], [], []>} : vector<8x32xf32>, vector<32x128xf32>, vector<8x128xf32> -> vector<8x128xf32>
    %169 = arith.addf %167, %168 : vector<8x128xf32>
    %170 = arith.negf %169 : vector<8x128xf32>
    %171 = math.exp %170 : vector<8x128xf32>
    %cst_35 = arith.constant 1.000000e+00 : f32
    %172 = vector.broadcast %cst_35 : f32 to vector<8x128xf32>
    %173 = arith.addf %172, %171 : vector<8x128xf32>
    %174 = arith.divf %172, %173 : vector<8x128xf32>
    %175 = math.tanh %169 : vector<8x128xf32>
    %176 = vector.extract_strided_slice %174 {offsets = [0, 0], sizes = [8, 32], strides = [1, 1]} : vector<8x128xf32> to vector<8x32xf32>
    %177 = vector.extract_strided_slice %174 {offsets = [0, 32], sizes = [8, 32], strides = [1, 1]} : vector<8x128xf32> to vector<8x32xf32>
    %178 = vector.extract_strided_slice %175 {offsets = [0, 64], sizes = [8, 32], strides = [1, 1]} : vector<8x128xf32> to vector<8x32xf32>
    %179 = vector.extract_strided_slice %174 {offsets = [0, 96], sizes = [8, 32], strides = [1, 1]} : vector<8x128xf32> to vector<8x32xf32>
    %180 = arith.mulf %177, %166 : vector<8x32xf32>
    %181 = arith.mulf %176, %178 : vector<8x32xf32>
    %182 = arith.addf %180, %181 : vector<8x32xf32>
    %183 = math.tanh %182 : vector<8x32xf32>
    %184 = arith.mulf %179, %183 : vector<8x32xf32>
    %185 = vector.extract_strided_slice %163 {offsets = [8, 0], sizes = [8, 128], strides = [1, 1]} : vector<64x128xf32> to vector<8x128xf32>
    %cst_36 = arith.constant dense<0.000000e+00> : vector<8x128xf32>
    %186 = tpu.matmul %184, %164, %cst_36 {dimension_numbers = #tpu.dot_dimension_numbers<[1], [0], [0], [1], [0, 0, 1, 1], [], []>} : vector<8x32xf32>, vector<32x128xf32>, vector<8x128xf32> -> vector<8x128xf32>
    %187 = arith.addf %185, %186 : vector<8x128xf32>
    %188 = arith.negf %187 : vector<8x128xf32>
    %189 = math.exp %188 : vector<8x128xf32>
    %cst_37 = arith.constant 1.000000e+00 : f32
    %190 = vector.broadcast %cst_37 : f32 to vector<8x128xf32>
    %191 = arith.addf %190, %189 : vector<8x128xf32>
    %192 = arith.divf %190, %191 : vector<8x128xf32>
    %193 = math.tanh %187 : vector<8x128xf32>
    %194 = vector.extract_strided_slice %192 {offsets = [0, 0], sizes = [8, 32], strides = [1, 1]} : vector<8x128xf32> to vector<8x32xf32>
    %195 = vector.extract_strided_slice %192 {offsets = [0, 32], sizes = [8, 32], strides = [1, 1]} : vector<8x128xf32> to vector<8x32xf32>
    %196 = vector.extract_strided_slice %193 {offsets = [0, 64], sizes = [8, 32], strides = [1, 1]} : vector<8x128xf32> to vector<8x32xf32>
    %197 = vector.extract_strided_slice %192 {offsets = [0, 96], sizes = [8, 32], strides = [1, 1]} : vector<8x128xf32> to vector<8x32xf32>
    %198 = arith.mulf %195, %182 : vector<8x32xf32>
    %199 = arith.mulf %194, %196 : vector<8x32xf32>
    %200 = arith.addf %198, %199 : vector<8x32xf32>
    %201 = math.tanh %200 : vector<8x32xf32>
    %202 = arith.mulf %197, %201 : vector<8x32xf32>
    %203 = vector.extract_strided_slice %163 {offsets = [16, 0], sizes = [8, 128], strides = [1, 1]} : vector<64x128xf32> to vector<8x128xf32>
    %cst_38 = arith.constant dense<0.000000e+00> : vector<8x128xf32>
    %204 = tpu.matmul %202, %164, %cst_38 {dimension_numbers = #tpu.dot_dimension_numbers<[1], [0], [0], [1], [0, 0, 1, 1], [], []>} : vector<8x32xf32>, vector<32x128xf32>, vector<8x128xf32> -> vector<8x128xf32>
    %205 = arith.addf %203, %204 : vector<8x128xf32>
    %206 = arith.negf %205 : vector<8x128xf32>
    %207 = math.exp %206 : vector<8x128xf32>
    %cst_39 = arith.constant 1.000000e+00 : f32
    %208 = vector.broadcast %cst_39 : f32 to vector<8x128xf32>
    %209 = arith.addf %208, %207 : vector<8x128xf32>
    %210 = arith.divf %208, %209 : vector<8x128xf32>
    %211 = math.tanh %205 : vector<8x128xf32>
    %212 = vector.extract_strided_slice %210 {offsets = [0, 0], sizes = [8, 32], strides = [1, 1]} : vector<8x128xf32> to vector<8x32xf32>
    %213 = vector.extract_strided_slice %210 {offsets = [0, 32], sizes = [8, 32], strides = [1, 1]} : vector<8x128xf32> to vector<8x32xf32>
    %214 = vector.extract_strided_slice %211 {offsets = [0, 64], sizes = [8, 32], strides = [1, 1]} : vector<8x128xf32> to vector<8x32xf32>
    %215 = vector.extract_strided_slice %210 {offsets = [0, 96], sizes = [8, 32], strides = [1, 1]} : vector<8x128xf32> to vector<8x32xf32>
    %216 = arith.mulf %213, %200 : vector<8x32xf32>
    %217 = arith.mulf %212, %214 : vector<8x32xf32>
    %218 = arith.addf %216, %217 : vector<8x32xf32>
    %219 = math.tanh %218 : vector<8x32xf32>
    %220 = arith.mulf %215, %219 : vector<8x32xf32>
    %221 = vector.extract_strided_slice %163 {offsets = [24, 0], sizes = [8, 128], strides = [1, 1]} : vector<64x128xf32> to vector<8x128xf32>
    %cst_40 = arith.constant dense<0.000000e+00> : vector<8x128xf32>
    %222 = tpu.matmul %220, %164, %cst_40 {dimension_numbers = #tpu.dot_dimension_numbers<[1], [0], [0], [1], [0, 0, 1, 1], [], []>} : vector<8x32xf32>, vector<32x128xf32>, vector<8x128xf32> -> vector<8x128xf32>
    %223 = arith.addf %221, %222 : vector<8x128xf32>
    %224 = arith.negf %223 : vector<8x128xf32>
    %225 = math.exp %224 : vector<8x128xf32>
    %cst_41 = arith.constant 1.000000e+00 : f32
    %226 = vector.broadcast %cst_41 : f32 to vector<8x128xf32>
    %227 = arith.addf %226, %225 : vector<8x128xf32>
    %228 = arith.divf %226, %227 : vector<8x128xf32>
    %229 = math.tanh %223 : vector<8x128xf32>
    %230 = vector.extract_strided_slice %228 {offsets = [0, 0], sizes = [8, 32], strides = [1, 1]} : vector<8x128xf32> to vector<8x32xf32>
    %231 = vector.extract_strided_slice %228 {offsets = [0, 32], sizes = [8, 32], strides = [1, 1]} : vector<8x128xf32> to vector<8x32xf32>
    %232 = vector.extract_strided_slice %229 {offsets = [0, 64], sizes = [8, 32], strides = [1, 1]} : vector<8x128xf32> to vector<8x32xf32>
    %233 = vector.extract_strided_slice %228 {offsets = [0, 96], sizes = [8, 32], strides = [1, 1]} : vector<8x128xf32> to vector<8x32xf32>
    %234 = arith.mulf %231, %218 : vector<8x32xf32>
    %235 = arith.mulf %230, %232 : vector<8x32xf32>
    %236 = arith.addf %234, %235 : vector<8x32xf32>
    %237 = math.tanh %236 : vector<8x32xf32>
    %238 = arith.mulf %233, %237 : vector<8x32xf32>
    %239 = vector.extract_strided_slice %163 {offsets = [32, 0], sizes = [8, 128], strides = [1, 1]} : vector<64x128xf32> to vector<8x128xf32>
    %cst_42 = arith.constant dense<0.000000e+00> : vector<8x128xf32>
    %240 = tpu.matmul %238, %164, %cst_42 {dimension_numbers = #tpu.dot_dimension_numbers<[1], [0], [0], [1], [0, 0, 1, 1], [], []>} : vector<8x32xf32>, vector<32x128xf32>, vector<8x128xf32> -> vector<8x128xf32>
    %241 = arith.addf %239, %240 : vector<8x128xf32>
    %242 = arith.negf %241 : vector<8x128xf32>
    %243 = math.exp %242 : vector<8x128xf32>
    %cst_43 = arith.constant 1.000000e+00 : f32
    %244 = vector.broadcast %cst_43 : f32 to vector<8x128xf32>
    %245 = arith.addf %244, %243 : vector<8x128xf32>
    %246 = arith.divf %244, %245 : vector<8x128xf32>
    %247 = math.tanh %241 : vector<8x128xf32>
    %248 = vector.extract_strided_slice %246 {offsets = [0, 0], sizes = [8, 32], strides = [1, 1]} : vector<8x128xf32> to vector<8x32xf32>
    %249 = vector.extract_strided_slice %246 {offsets = [0, 32], sizes = [8, 32], strides = [1, 1]} : vector<8x128xf32> to vector<8x32xf32>
    %250 = vector.extract_strided_slice %247 {offsets = [0, 64], sizes = [8, 32], strides = [1, 1]} : vector<8x128xf32> to vector<8x32xf32>
    %251 = vector.extract_strided_slice %246 {offsets = [0, 96], sizes = [8, 32], strides = [1, 1]} : vector<8x128xf32> to vector<8x32xf32>
    %252 = arith.mulf %249, %236 : vector<8x32xf32>
    %253 = arith.mulf %248, %250 : vector<8x32xf32>
    %254 = arith.addf %252, %253 : vector<8x32xf32>
    %255 = math.tanh %254 : vector<8x32xf32>
    %256 = arith.mulf %251, %255 : vector<8x32xf32>
    %257 = vector.extract_strided_slice %163 {offsets = [40, 0], sizes = [8, 128], strides = [1, 1]} : vector<64x128xf32> to vector<8x128xf32>
    %cst_44 = arith.constant dense<0.000000e+00> : vector<8x128xf32>
    %258 = tpu.matmul %256, %164, %cst_44 {dimension_numbers = #tpu.dot_dimension_numbers<[1], [0], [0], [1], [0, 0, 1, 1], [], []>} : vector<8x32xf32>, vector<32x128xf32>, vector<8x128xf32> -> vector<8x128xf32>
    %259 = arith.addf %257, %258 : vector<8x128xf32>
    %260 = arith.negf %259 : vector<8x128xf32>
    %261 = math.exp %260 : vector<8x128xf32>
    %cst_45 = arith.constant 1.000000e+00 : f32
    %262 = vector.broadcast %cst_45 : f32 to vector<8x128xf32>
    %263 = arith.addf %262, %261 : vector<8x128xf32>
    %264 = arith.divf %262, %263 : vector<8x128xf32>
    %265 = math.tanh %259 : vector<8x128xf32>
    %266 = vector.extract_strided_slice %264 {offsets = [0, 0], sizes = [8, 32], strides = [1, 1]} : vector<8x128xf32> to vector<8x32xf32>
    %267 = vector.extract_strided_slice %264 {offsets = [0, 32], sizes = [8, 32], strides = [1, 1]} : vector<8x128xf32> to vector<8x32xf32>
    %268 = vector.extract_strided_slice %265 {offsets = [0, 64], sizes = [8, 32], strides = [1, 1]} : vector<8x128xf32> to vector<8x32xf32>
    %269 = vector.extract_strided_slice %264 {offsets = [0, 96], sizes = [8, 32], strides = [1, 1]} : vector<8x128xf32> to vector<8x32xf32>
    %270 = arith.mulf %267, %254 : vector<8x32xf32>
    %271 = arith.mulf %266, %268 : vector<8x32xf32>
    %272 = arith.addf %270, %271 : vector<8x32xf32>
    %273 = math.tanh %272 : vector<8x32xf32>
    %274 = arith.mulf %269, %273 : vector<8x32xf32>
    %275 = vector.extract_strided_slice %163 {offsets = [48, 0], sizes = [8, 128], strides = [1, 1]} : vector<64x128xf32> to vector<8x128xf32>
    %cst_46 = arith.constant dense<0.000000e+00> : vector<8x128xf32>
    %276 = tpu.matmul %274, %164, %cst_46 {dimension_numbers = #tpu.dot_dimension_numbers<[1], [0], [0], [1], [0, 0, 1, 1], [], []>} : vector<8x32xf32>, vector<32x128xf32>, vector<8x128xf32> -> vector<8x128xf32>
    %277 = arith.addf %275, %276 : vector<8x128xf32>
    %278 = arith.negf %277 : vector<8x128xf32>
    %279 = math.exp %278 : vector<8x128xf32>
    %cst_47 = arith.constant 1.000000e+00 : f32
    %280 = vector.broadcast %cst_47 : f32 to vector<8x128xf32>
    %281 = arith.addf %280, %279 : vector<8x128xf32>
    %282 = arith.divf %280, %281 : vector<8x128xf32>
    %283 = math.tanh %277 : vector<8x128xf32>
    %284 = vector.extract_strided_slice %282 {offsets = [0, 0], sizes = [8, 32], strides = [1, 1]} : vector<8x128xf32> to vector<8x32xf32>
    %285 = vector.extract_strided_slice %282 {offsets = [0, 32], sizes = [8, 32], strides = [1, 1]} : vector<8x128xf32> to vector<8x32xf32>
    %286 = vector.extract_strided_slice %283 {offsets = [0, 64], sizes = [8, 32], strides = [1, 1]} : vector<8x128xf32> to vector<8x32xf32>
    %287 = vector.extract_strided_slice %282 {offsets = [0, 96], sizes = [8, 32], strides = [1, 1]} : vector<8x128xf32> to vector<8x32xf32>
    %288 = arith.mulf %285, %272 : vector<8x32xf32>
    %289 = arith.mulf %284, %286 : vector<8x32xf32>
    %290 = arith.addf %288, %289 : vector<8x32xf32>
    %291 = math.tanh %290 : vector<8x32xf32>
    %292 = arith.mulf %287, %291 : vector<8x32xf32>
    %293 = vector.extract_strided_slice %163 {offsets = [56, 0], sizes = [8, 128], strides = [1, 1]} : vector<64x128xf32> to vector<8x128xf32>
    %cst_48 = arith.constant dense<0.000000e+00> : vector<8x128xf32>
    %294 = tpu.matmul %292, %164, %cst_48 {dimension_numbers = #tpu.dot_dimension_numbers<[1], [0], [0], [1], [0, 0, 1, 1], [], []>} : vector<8x32xf32>, vector<32x128xf32>, vector<8x128xf32> -> vector<8x128xf32>
    %295 = arith.addf %293, %294 : vector<8x128xf32>
    %296 = arith.negf %295 : vector<8x128xf32>
    %297 = math.exp %296 : vector<8x128xf32>
    %cst_49 = arith.constant 1.000000e+00 : f32
    %298 = vector.broadcast %cst_49 : f32 to vector<8x128xf32>
    %299 = arith.addf %298, %297 : vector<8x128xf32>
    %300 = arith.divf %298, %299 : vector<8x128xf32>
    %301 = math.tanh %295 : vector<8x128xf32>
    %302 = vector.extract_strided_slice %300 {offsets = [0, 0], sizes = [8, 32], strides = [1, 1]} : vector<8x128xf32> to vector<8x32xf32>
    %303 = vector.extract_strided_slice %300 {offsets = [0, 32], sizes = [8, 32], strides = [1, 1]} : vector<8x128xf32> to vector<8x32xf32>
    %304 = vector.extract_strided_slice %301 {offsets = [0, 64], sizes = [8, 32], strides = [1, 1]} : vector<8x128xf32> to vector<8x32xf32>
    %305 = vector.extract_strided_slice %300 {offsets = [0, 96], sizes = [8, 32], strides = [1, 1]} : vector<8x128xf32> to vector<8x32xf32>
    %306 = arith.mulf %303, %290 : vector<8x32xf32>
    %307 = arith.mulf %302, %304 : vector<8x32xf32>
    %308 = arith.addf %306, %307 : vector<8x32xf32>
    %309 = math.tanh %308 : vector<8x32xf32>
    %310 = arith.mulf %305, %309 : vector<8x32xf32>
    %311 = tpu.concatenate %184, %202, %220, %238, %256, %274, %292, %310 in 0 : vector<8x32xf32>, vector<8x32xf32>, vector<8x32xf32>, vector<8x32xf32>, vector<8x32xf32>, vector<8x32xf32>, vector<8x32xf32>, vector<8x32xf32> -> vector<64x32xf32>
    %c0_50 = arith.constant 0 : index
    %c0_51 = arith.constant 0 : index
    %312 = vector.load %arg7[%c0_50, %c0_51] : memref<32x128xf32, #tpu.memory_space<vmem>>, vector<32x128xf32>
    %cst_52 = arith.constant dense<0.000000e+00> : vector<64x128xf32>
    %313 = tpu.matmul %311, %312, %cst_52 {dimension_numbers = #tpu.dot_dimension_numbers<[1], [0], [0], [1], [0, 0, 1, 1], [], []>} : vector<64x32xf32>, vector<32x128xf32>, vector<64x128xf32> -> vector<64x128xf32>
    %c0_53 = arith.constant 0 : index
    %c0_54 = arith.constant 0 : index
    %314 = vector.load %arg8[%c0_53, %c0_54] : memref<1x128xf32, #tpu.memory_space<vmem>>, vector<1x128xf32>
    %315 = vector.broadcast %314 : vector<1x128xf32> to vector<64x128xf32>
    %316 = arith.addf %313, %315 : vector<64x128xf32>
    %c0_55 = arith.constant 0 : index
    %c0_56 = arith.constant 0 : index
    %317 = vector.load %arg9[%c0_55, %c0_56] : memref<64x128xf32, #tpu.memory_space<vmem>>, vector<64x128xf32>
    tpu.vector_store %arg9[%c0_55, %c0_56], %316 {strides = array<i32>} : memref<64x128xf32, #tpu.memory_space<vmem>>, vector<64x128xf32>,
    return
  }
}

</mosaic_0001>

<bundles_post_ra>
// kernel: tpu_custom_call.1
= control target key start
LH: loop header
LB: loop body
LE: loop exit
PB: predicated region body
PF: predicated region fallthrough
CT: control target
= control target key end

     0   :  { %14 = vsyncpa [#allocation3], 0  ;;  %s3333_s0 = inlined_call_operand.vmem [shape: s32[64,1], index: 0, kind: input, shape index: {}]   ;;  %s3334_s1 = inlined_call_operand.vmem [shape: f32[26,128], index: 1, kind: input, shape index: {}]   ;;  %s3335_s2 = inlined_call_operand.vmem [shape: f32[32,128], index: 2, kind: input, shape index: {}]   ;;  %s3336_s3 = inlined_call_operand.vmem [shape: f32[1,128], index: 3, kind: input, shape index: {}]   ;;  %s3337_s4 = inlined_call_operand.hbm [shape: f32[32,128], index: 4, kind: input, shape index: {}]   ;;  %s3338_s5 = inlined_call_operand.hbm [shape: f32[32,128], index: 5, kind: input, shape index: {}]   ;;  %s3339_s6 = inlined_call_operand.vmem [shape: f32[1,128], index: 6, kind: input, shape index: {}]   ;;  %s3340_s7 = inlined_call_operand.hbm [shape: f32[32,128], index: 7, kind: input, shape index: {}]   ;;  %s3341_s8 = inlined_call_operand.vmem [shape: f32[1,128], index: 8, kind: input, shape index: {}]   ;;  %s3342_s9 = inlined_call_operand.hbm [shape: f32[64,128], index: 9, kind: output, shape index: {}]  }
   0x1   :  { %15 = vsyncpa [#allocation6], 0 }
   0x2   :  { %16 = vsyncpa [#allocation4], 0  ;;  %s2800_s30 = smov [#allocation5]   ;;  %s2801_s11 = smov [#allocation2]  }
   0x3   :  { %s42_s10 = sshll.u32 %s2800_s30, 4  ;;  %s30_s12 = sshll.u32 %s2801_s11, 4  ;;  %s43_s10 = int_to_ptr.vmem [resolvable:$true] %s42_s10  ;;  %s31_s12 = int_to_ptr.vmem [resolvable:$true] %s30_s12 }
   0x4   :  { %s2722_s13 = scalar_lea.vmem %s43_s10, 512  ;;  %p2727_p1 = scmp.lt.s32.totalorder %s43_s10, %s43_s10 }
   0x5   :  { %p2723_p0 = scmp.ne.s32.totalorder %s43_s10, %s2722_s13  ;;  %p2728_p2 = scmp.lt.s32.totalorder %s2722_s13, %s2722_s13 }
   0x7   :  { %p2729_p3 = por %p2728_p2, %p2727_p1 }
   0x9   :  { %p2730_p4 = pnand %p2729_p3, %p2723_p0 }
   0xb   :  { %2733 = shalt.err (!%p2730_p4)
}
   0xc   :  { %s2802_s14 = smov 128   ;;  %s2803_s15 = smov 8  }
   0xd   :  { %48 = dma.hbm_to_vmem [thread:$0]  %s3338_s5, 512, %s43_s10, [#allocation6], %s2802_s14, %s2802_s14, %s2803_s15  }
   0xe   :  { %s2742_s18 = scalar_lea.vmem %s31_s12, 512  ;;  %p2747_p6 = scmp.lt.s32.totalorder %s31_s12, %s31_s12 }
   0xf   :  { %p2743_p5 = scmp.ne.s32.totalorder %s31_s12, %s2742_s18  ;;  %p2748_p7 = scmp.lt.s32.totalorder %s2742_s18, %s2742_s18 }
  0x11   :  { %p2749_p8 = por %p2748_p7, %p2747_p6 }
  0x13   :  { %p2750_p9 = pnand %p2749_p8, %p2743_p5 }
  0x15   :  { %2753 = shalt.err (!%p2750_p9)
}
  0x16   :  { %36 = dma.hbm_to_vmem [thread:$0]  %s3337_s4, 512, %s31_s12, [#allocation3], %s2802_s14, %s2802_s14, %s2803_s15  }
  0x17   :  { %s2804_s21 = smov [#allocation7]  }
  0x18   :  { %s56_s22 = sshll.u32 %s2804_s21, 4  ;;  %s57_s22 = int_to_ptr.vmem [resolvable:$true] %s56_s22 }
  0x19   :  { %s2762_s23 = scalar_lea.vmem %s57_s22, 512  ;;  %p2767_p11 = scmp.lt.s32.totalorder %s57_s22, %s57_s22 }
  0x1a   :  { %p2763_p10 = scmp.ne.s32.totalorder %s57_s22, %s2762_s23  ;;  %p2768_p12 = scmp.lt.s32.totalorder %s2762_s23, %s2762_s23 }
  0x1c   :  { %p2769_p13 = por %p2768_p12, %p2767_p11 }
  0x1e   :  { %p2770_p0 = pnand %p2769_p13, %p2763_p10 }
  0x20   :  { %2773 = shalt.err (!%p2770_p0)
}
  0x21   :  { %62 = dma.hbm_to_vmem [thread:$0]  %s3340_s7, 512, %s57_s22, [#allocation6], %s2802_s14, %s2802_s14, %s2803_s15  }
  0x22   :  { %2794 = dma.done.wait [#allocation3], 512  }
  0x23   :  { %2795 = vsyncadd [#allocation3], 4294966784 }
  0x24   :  { %2796 = dma.done.wait [#allocation6], 1024  }
  0x25   :  { %2797 = vsyncadd [#allocation6], 4294966272  ;;  %v2805_v0 = vmov 0   ;;  %v80_v1 = vld [vmem:[%s3333_s0 + $0x20] sm:$0xff]  ;;  %vm168_vm0 = vcmask 1041408   ;;  %v81_v3 = vld [vmem:[%s3333_s0 + $0x28] sm:$0xff]  ;;  %v74_v12 = vlaneseq }
  0x26   :  { %2585 = vset.pattern.permute.xlu1 %v2805_v0  ;;  %2584 = vset.pattern.permute.xlu0 %v2805_v0  ;;  %v76_v2 = vld [vmem:[%s3333_s0] sm:$0xff]  ;;  %v82_v4 = vld [vmem:[%s3333_s0 + $0x30] sm:$0xff]  ;;  %v135_v5 = vld [vmem:[%s3334_s1 + $0x18] sm:$0x3]  ;;  %v2806_v11 = vmov 0.0   ;;  %vm143_vm1 = vcmask 211968  }
  0x27   :  { %97 = vperm.xlu0 %2584, %v80_v1   ;;  %85 = vperm.xlu1 %2585, %v76_v2   ;;  %v134_v6 = vld [vmem:[%s3334_s1 + $0x10] sm:$0xff]  ;;  %v133_v7 = vld [vmem:[%s3334_s1 + $0x8] sm:$0xff]  ;;  %v83_v9 = vld [vmem:[%s3333_s0 + $0x38] sm:$0xff]  ;;  %v2911_v13 = vand.u32 127, %v74_v12  ;;  %vm2807_vm8 = vmmov 0   ;;  %s2808_s29 = smov 64  }
  0x28   :  { %2565 = vmatprep.subr.msk.mxu1 %vm168_vm0, %v135_v5  ;;  %2329 = vmatprep.subr.msk.mxu0 %vm168_vm0, %v135_v5  ;;  %v77_v8 = vld [vmem:[%s3333_s0 + $0x8] sm:$0xff]  ;;  %v132_v10 = vld [vmem:[%s3334_s1] sm:$0xff]  ;;  %v2924_v20 = vld [vmem:[%s3335_s2 + $0x18] sm:$0xff]  ;;  %vm281_vm9 = vcmask 261120  }
  0x29   :  { %2569 = vmatpush3.msk.msra.mxu1 %vm168_vm0, %v135_v5  ;;  %2330 = vmatpush3.msk.msra.mxu0 %vm168_vm0, %v135_v5  ;;  %v2932_v23 = vld [vmem:[%s3335_s2 + $0x10] sm:$0xff]  ;;  %v2945_v28 = vld [vmem:[%s3335_s2 + $0x8] sm:$0xff]  ;;  %v2953_v29 = vld [vmem:[%s3335_s2] sm:$0xff] }
  0x2a   :  { %2566 = vmatprep.subr.mxu1 %v134_v6  ;;  %2331 = vmatprep.subr.mxu0 %v134_v6  ;;  %v2989_v34 = vld [vmem:[%s3336_s3] ss:$0 sm:$0xff]  ;;  %s2809_s3 = smov 32   ;;  %v78_v2 = vld [vmem:[%s3333_s0 + $0x10] sm:$0xff] }
  0x2b   :  { %100 = vperm.xlu0 %2584, %v81_v3   ;;  %103 = vperm.xlu1 %2585, %v82_v4  }
  0x2c   :  { %2570 = vmatpush3.msra.mxu1 %v134_v6  ;;  %2332 = vmatpush3.msra.mxu0 %v134_v6 }
  0x2d   :  { %2567 = vmatprep.subr.mxu1 %v133_v7  ;;  %2333 = vmatprep.subr.mxu0 %v133_v7 }
  0x2e   :  { %2571 = vmatpush3.msra.mxu1 %v133_v7  ;;  %2334 = vmatpush3.msra.mxu0 %v133_v7 }
  0x2f   :  { %88 = vperm.xlu0 %2584, %v77_v8   ;;  %106 = vperm.xlu1 %2585, %v83_v9   ;;  %v79_v9 = vld [vmem:[%s3333_s0 + $0x18] sm:$0xff] }
  0x30   :  { %2568 = vmatprep.subr.mxu1 %v132_v10  ;;  %2335 = vmatprep.subr.mxu0 %v132_v10 }
  0x31   :  { %2572 = vmatpush3.msra.mxu1 %v132_v10  ;;  %2336 = vmatpush3.msra.mxu0 %v132_v10 }
  0x32   :  { %2349 = vmatprep.subr.mxu1 %v2806_v11  ;;  %2371 = vmatprep.subr.mxu0 %v2806_v11 }
  0xa2   :  { %v98_v14 = vpop.permute.xlu0 %97  ;;  %v86_v15 = vpop.permute.xlu1 %85 }
  0xa3   :  { %vm112_vm2 = vcmp.eq.s32.totalorder %v98_v14, %v2911_v13  ;;  %vm108_vm3 = vcmp.eq.s32.totalorder %v86_v15, %v2911_v13 }
  0xa4   :  { %v2147_v16 = vsel %vm108_vm3, 1.0, %v2806_v11  ;;  %v2151_v17 = vsel %vm112_vm2, 1.0, %v2806_v11 }
  0xa5   :  { %2337 = vmatprep.mubr.msk.f32.mxu0 %vm143_vm1, %v2147_v16  ;;  %2343 = vmatprep.mubr.msk.f32.mxu1 %vm143_vm1, %v2151_v17 }
  0xa6   :  { %v101_v18 = vpop.permute.xlu0 %100  ;;  %v104_v19 = vpop.permute.xlu1 %103 }
  0xa7   :  { %vm113_vm4 = vcmp.eq.s32.totalorder %v101_v18, %v2911_v13  ;;  %vm114_vm5 = vcmp.eq.s32.totalorder %v104_v19, %v2911_v13 }
  0xa8   :  { %v2152_v21 = vsel %vm113_vm4, 1.0, %v2806_v11  ;;  %v2153_v22 = vsel %vm114_vm5, 1.0, %v2806_v11 }
  0xa9   :  { %2344 = vmatmul.mubr.msk.f32.vlgmr.msra.gmra.mxu1 %vm143_vm1, %v2152_v21 }
  0xaa   :  { %2350 = vmatpush3.msra.mxu1 %v2924_v20  ;;  %v89_v24 = vpop.permute.xlu0 %88  ;;  %2346 = vmatprep.mubr.msk.f32.mxu1 %vm143_vm1, %v2153_v22  ;;  %v107_v25 = vpop.permute.xlu1 %106 }
  0xab   :  { %2351 = vmatprep.subr.mxu1 %v2806_v11  ;;  %vm109_vm6 = vcmp.eq.s32.totalorder %v89_v24, %v2911_v13  ;;  %vm115_vm7 = vcmp.eq.s32.totalorder %v107_v25, %v2911_v13 }
  0xac   :  { %v2148_v26 = vsel %vm109_vm6, 1.0, %v2806_v11  ;;  %v2154_v27 = vsel %vm115_vm7, 1.0, %v2806_v11  ;;  %2352 = vmatpush3.msra.mxu1 %v2932_v23 }
  0xad   :  { %2353 = vmatprep.subr.mxu1 %v2806_v11  ;;  %2338 = vmatmul.mubr.msk.f32.vlgmr.msra.gmra.mxu0 %vm143_vm1, %v2148_v26 }
  0xae   :  { %2347 = vmatmul.mubr.msk.f32.gmra.mxu1 %vm143_vm1, %v2154_v27  ;;  %2372 = vmatpush3.msra.mxu0 %v2924_v20 }
  0xaf   :  { %2354 = vmatpush3.msra.mxu1 %v2945_v28  ;;  %2357 = vmatprep.mubr.msk.f32.mxu1 %vm2807_vm8, %v2806_v11 }
  0xb0   :  { %2355 = vmatprep.subr.mxu1 %v2806_v11  ;;  %2373 = vmatprep.subr.mxu0 %v2806_v11 }
  0xb1   :  { %2356 = vmatpush3.msra.mxu1 %v2953_v29  ;;  %2374 = vmatpush3.msra.mxu0 %v2932_v23 }
  0xb2   :  { %2358 = vmatmul.mubr.f32.vlgmr.msra.gmra.mxu1 %v2806_v11  ;;  %2360 = vmatprep.subr.mxu1 %v2806_v11 }
  0xb3   :  { %2361 = vmatpush3.msra.mxu1 %v2924_v20  ;;  %2368 = vmatprep.mubr.msk.f32.mxu1 %vm2807_vm8, %v2806_v11 }
  0xb4   :  { %2362 = vmatprep.subr.mxu1 %v2806_v11  ;;  %2375 = vmatprep.subr.mxu0 %v2806_v11 }
  0xb5   :  { %2363 = vmatpush3.msra.mxu1 %v2932_v23  ;;  %2376 = vmatpush3.msra.mxu0 %v2945_v28 }
  0xb6   :  { %2364 = vmatprep.subr.mxu1 %v2806_v11  ;;  %2377 = vmatprep.subr.mxu0 %v2806_v11 }
  0xb7   :  { %2365 = vmatpush3.msra.mxu1 %v2945_v28  ;;  %2378 = vmatpush3.msra.mxu0 %v2953_v29 }
  0xb8   :  { %2366 = vmatprep.subr.mxu1 %v2806_v11  ;;  %2393 = vmatprep.subr.mxu0 %v2806_v11 }
  0xb9   :  { %2367 = vmatpush3.msra.mxu1 %v2953_v29 }
  0xba   :  { %2382 = vmatprep.subr.mxu1 %v2806_v11 }
 0x169   :  { %v2980_v30 = vpop.f32.mrf.mxu1 }
 0x16b   :  { %v2982_v31 = vpop.f32.mrf.mxu1 }
 0x16d   :  { %v2339_v32 = vpop.f32.mrf.mxu0 }
 0x16e   :  { %v2984_v33 = vpop.f32.mrf.mxu1  ;;  %v244_v55 = vadd.f32 %v2339_v32, %v2989_v34 }
 0x16f   :  { %v238_v35 = vpop.f32.mrf.mxu0 }
 0x170   :  { %v239_v36 = vadd.f32 %v2989_v34, %v238_v35  ;;  %v2992_v37 = vpop.f32.mrf.mxu1 }
 0x172   :  { %v351_v38 = vpop.f32.mrf.mxu1 }
 0x173   :  { %v355_v39 = vadd.f32 %v351_v38, %v239_v36 }
 0x174   :  { %v2359_v40 = vpop.f32.mrf.mxu1 }
 0x175   :  { %2586 = vtanh.f32 %v355_v39  ;;  %v2165_v42 = vmul.f32 -1.442695, %v355_v39 }
 0x177   :  { %2588 = vpow2.f32 %v2165_v42 }
 0x182   :  { %v2587_v41 = vpop.eup %2586 }
 0x183   :  { %365 = vrot.lane.b32.xlu0 %v2587_v41, %s2808_s29 }
 0x184   :  { %v2589_v43 = vpop.eup %2588 }
 0x185   :  { %v359_v44 = vadd.f32 1.0, %v2589_v43 }
 0x187   :  { %2590 = vrcp.f32 %v359_v44 }
 0x194   :  { %v2591_v45 = vpop.eup %2590 }
 0x195   :  { %v363_v48 = vmul.f32 0.0, %v2591_v45 }
 0x1f5   :  { %v366_v46 = vpop.permute.xlu0 %365 }
 0x1f6   :  { %v368_v47 = vmul.f32 %v2591_v45, %v366_v46 }
 0x1f8   :  { %370 = vrot.lane.b32.xlu1 %v368_v47, %s2809_s3 }
 0x26a   :  { %v371_v49 = vpop.permute.xlu1 %370 }
 0x26b   :  { %v373_v50 = vadd.f32 %v371_v49, %v363_v48 }
 0x26d   :  { %2592 = vtanh.f32 %v373_v50 }
 0x27a   :  { %v2593_v51 = vpop.eup %2592 }
 0x27b   :  { %376 = vrot.lane.b32.xlu0 %v2593_v51, %s2808_s29 }
 0x2ed   :  { %v377_v52 = vpop.permute.xlu0 %376 }
 0x2ee   :  { %v379_v53 = vmul.f32 %v2591_v45, %v377_v52 }
 0x2f0   :  { %381 = vrot.lane.b32.xlu1 %v379_v53, %s2809_s3 }
 0x362   :  { %v2998_v54 = vpop.permute.xlu1 %381 }
 0x363   :  { %2369 = vmatmul.mubr.msk.f32.vlgmr.msra.gmra.mxu1 %vm281_vm9, %v2998_v54 }
 0x364   :  { %2383 = vmatpush3.msra.mxu1 %v2924_v20  ;;  %2390 = vmatprep.mubr.msk.f32.mxu1 %vm2807_vm8, %v2806_v11 }
 0x365   :  { %2384 = vmatprep.subr.mxu1 %v2806_v11 }
 0x366   :  { %2385 = vmatpush3.msra.mxu1 %v2932_v23 }
 0x367   :  { %2386 = vmatprep.subr.mxu1 %v2806_v11 }
 0x368   :  { %2387 = vmatpush3.msra.mxu1 %v2945_v28 }
 0x369   :  { %2388 = vmatprep.subr.mxu1 %v2806_v11 }
 0x36a   :  { %2389 = vmatpush3.msra.mxu1 %v2953_v29 }
 0x36b   :  { %2404 = vmatprep.subr.mxu1 %v2806_v11 }
 0x423   :  { %v451_v56 = vpop.f32.mrf.mxu1 }
 0x424   :  { %v455_v57 = vadd.f32 %v451_v56, %v244_v55 }
 0x425   :  { %v2370_v58 = vpop.f32.mrf.mxu1 }
 0x426   :  { %2594 = vtanh.f32 %v455_v57  ;;  %v2167_v60 = vmul.f32 -1.442695, %v455_v57 }
 0x428   :  { %2596 = vpow2.f32 %v2167_v60 }
 0x433   :  { %v2595_v59 = vpop.eup %2594 }
 0x434   :  { %465 = vrot.lane.b32.xlu0 %v2595_v59, %s2808_s29 }
 0x435   :  { %v2597_v61 = vpop.eup %2596 }
 0x436   :  { %v459_v62 = vadd.f32 1.0, %v2597_v61 }
 0x438   :  { %2598 = vrcp.f32 %v459_v62 }
 0x445   :  { %v2599_v63 = vpop.eup %2598 }
 0x446   :  { %v463_v3 = vmul.f32 %v2599_v63, %v373_v50 }
 0x4a6   :  { %v466_v0 = vpop.permute.xlu0 %465 }
 0x4a7   :  { %v468_v1 = vmul.f32 %v2599_v63, %v466_v0  ;;  %v259_v0 = vadd.f32 %v2989_v34, %v2982_v31 }
 0x4a9   :  { %470 = vrot.lane.b32.xlu1 %v468_v1, %s2809_s3 }
 0x4ad   :  { %91 = vperm.xlu1 %2585, %v78_v2  }
 0x51b   :  { %v471_v4 = vpop.permute.xlu1 %470 }
 0x51c   :  { %v473_v5 = vadd.f32 %v471_v4, %v463_v3 }
 0x51e   :  { %2600 = vtanh.f32 %v473_v5 }
 0x528   :  { %v92_v6 = vpop.permute.xlu1 %91 }
 0x529   :  { %vm110_vm10 = vcmp.eq.s32.totalorder %v92_v6, %v2911_v13 }
 0x52a   :  { %v2149_v7 = vsel %vm110_vm10, 1.0, %v2806_v11 }
 0x52b   :  { %v2601_v8 = vpop.eup %2600  ;;  %2340 = vmatprep.mubr.msk.f32.mxu0 %vm143_vm1, %v2149_v7 }
 0x52c   :  { %476 = vrot.lane.b32.xlu0 %v2601_v8, %s2808_s29 }
 0x530   :  { %94 = vperm.xlu0 %2584, %v79_v9  }
 0x59e   :  { %v477_v10 = vpop.permute.xlu0 %476 }
 0x59f   :  { %v479_v12 = vmul.f32 %v2599_v63, %v477_v10 }
 0x5a1   :  { %481 = vrot.lane.b32.xlu1 %v479_v12, %s2809_s3 }
 0x5ab   :  { %v95_v14 = vpop.permute.xlu0 %94 }
 0x5ac   :  { %vm111_vm11 = vcmp.eq.s32.totalorder %v95_v14, %v2911_v13 }
 0x5ad   :  { %v2150_v15 = vsel %vm111_vm11, 1.0, %v2806_v11 }
 0x5ae   :  { %2341 = vmatmul.mubr.msk.f32.gmra.mxu0 %vm143_vm1, %v2150_v15 }
 0x5af   :  { %2379 = vmatprep.mubr.msk.f32.mxu0 %vm2807_vm8, %v2806_v11 }
 0x613   :  { %v3031_v16 = vpop.permute.xlu1 %481 }
 0x614   :  { %2380 = vmatmul.mubr.msk.f32.vlgmr.msra.gmra.mxu0 %vm281_vm9, %v3031_v16 }
 0x615   :  { %2394 = vmatpush3.msra.mxu0 %v2924_v20  ;;  %2401 = vmatprep.mubr.msk.f32.mxu0 %vm2807_vm8, %v2806_v11 }
 0x616   :  { %2395 = vmatprep.subr.mxu0 %v2806_v11 }
 0x617   :  { %2396 = vmatpush3.msra.mxu0 %v2932_v23 }
 0x618   :  { %2397 = vmatprep.subr.mxu0 %v2806_v11 }
 0x619   :  { %2398 = vmatpush3.msra.mxu0 %v2945_v28 }
 0x61a   :  { %2399 = vmatprep.subr.mxu0 %v2806_v11 }
 0x61b   :  { %2400 = vmatpush3.msra.mxu0 %v2953_v29 }
 0x61c   :  { %2415 = vmatprep.subr.mxu0 %v2806_v11 }
 0x66e   :  { %v2342_v13 = vpop.f32.mrf.mxu0 }
 0x66f   :  { %v254_v45 = vadd.f32 %v2342_v13, %v2989_v34 }
 0x670   :  { %v248_v17 = vpop.f32.mrf.mxu0 }
 0x671   :  { %v249_v18 = vadd.f32 %v2989_v34, %v248_v17 }
 0x6d4   :  { %v551_v19 = vpop.f32.mrf.mxu0 }
 0x6d5   :  { %v555_v21 = vadd.f32 %v551_v19, %v249_v18 }
 0x6d6   :  { %v2381_v22 = vpop.f32.mrf.mxu0 }
 0x6d7   :  { %2602 = vtanh.f32 %v555_v21  ;;  %v2169_v25 = vmul.f32 -1.442695, %v555_v21 }
 0x6d9   :  { %2604 = vpow2.f32 %v2169_v25 }
 0x6e4   :  { %v2603_v24 = vpop.eup %2602 }
 0x6e5   :  { %565 = vrot.lane.b32.xlu0 %v2603_v24, %s2808_s29 }
 0x6e6   :  { %v2605_v26 = vpop.eup %2604 }
 0x6e7   :  { %v559_v27 = vadd.f32 1.0, %v2605_v26 }
 0x6e9   :  { %2606 = vrcp.f32 %v559_v27 }
 0x6f6   :  { %v2607_v32 = vpop.eup %2606 }
 0x6f7   :  { %v563_v38 = vmul.f32 %v2607_v32, %v473_v5 }
 0x757   :  { %v566_v35 = vpop.permute.xlu0 %565 }
 0x758   :  { %v568_v36 = vmul.f32 %v2607_v32, %v566_v35 }
 0x75a   :  { %570 = vrot.lane.b32.xlu1 %v568_v36, %s2809_s3  ;;  %v1083_v36 = vld [vmem:[#allocation2 + $0x18] sm:$0xff] }
 0x7cc   :  { %v571_v39 = vpop.permute.xlu1 %570 }
 0x7cd   :  { %v573_v40 = vadd.f32 %v571_v39, %v563_v38 }
 0x7cf   :  { %2608 = vtanh.f32 %v573_v40 }
 0x7dc   :  { %v2609_v41 = vpop.eup %2608 }
 0x7dd   :  { %576 = vrot.lane.b32.xlu0 %v2609_v41, %s2808_s29 }
 0x84f   :  { %v577_v42 = vpop.permute.xlu0 %576 }
 0x850   :  { %v579_v43 = vmul.f32 %v2607_v32, %v577_v42  ;;  %v1082_v42 = vld [vmem:[#allocation2 + $0x10] sm:$0xff] }
 0x852   :  { %581 = vrot.lane.b32.xlu1 %v579_v43, %s2809_s3  ;;  %v1081_v43 = vld [vmem:[#allocation2 + $0x8] sm:$0xff] }
 0x8c4   :  { %v3050_v44 = vpop.permute.xlu1 %581 }
 0x8c5   :  { %2391 = vmatmul.mubr.msk.f32.vlgmr.msra.gmra.mxu1 %vm281_vm9, %v3050_v44 }
 0x8c6   :  { %2405 = vmatpush3.msra.mxu1 %v2924_v20  ;;  %2412 = vmatprep.mubr.msk.f32.mxu1 %vm2807_vm8, %v2806_v11 }
 0x8c7   :  { %2406 = vmatprep.subr.mxu1 %v2806_v11 }
 0x8c8   :  { %2407 = vmatpush3.msra.mxu1 %v2932_v23 }
 0x8c9   :  { %2408 = vmatprep.subr.mxu1 %v2806_v11 }
 0x8ca   :  { %2409 = vmatpush3.msra.mxu1 %v2945_v28 }
 0x8cb   :  { %2410 = vmatprep.subr.mxu1 %v2806_v11 }
 0x8cc   :  { %2411 = vmatpush3.msra.mxu1 %v2953_v29 }
 0x8cd   :  { %2426 = vmatprep.subr.mxu1 %v2806_v11 }
 0x985   :  { %v651_v46 = vpop.f32.mrf.mxu1 }
 0x986   :  { %v655_v47 = vadd.f32 %v651_v46, %v254_v45  ;;  %v1080_v45 = vld [vmem:[#allocation2] sm:$0xff] }
 0x987   :  { %v2392_v48 = vpop.f32.mrf.mxu1 }
 0x988   :  { %2610 = vtanh.f32 %v655_v47  ;;  %v2171_v50 = vmul.f32 -1.442695, %v655_v47 }
 0x98a   :  { %2612 = vpow2.f32 %v2171_v50 }
 0x995   :  { %v2611_v49 = vpop.eup %2610 }
 0x996   :  { %665 = vrot.lane.b32.xlu0 %v2611_v49, %s2808_s29 }
 0x997   :  { %v2613_v51 = vpop.eup %2612 }
 0x998   :  { %v659_v52 = vadd.f32 1.0, %v2613_v51 }
 0x99a   :  { %2614 = vrcp.f32 %v659_v52 }
 0x9a7   :  { %v2615_v53 = vpop.eup %2614 }
 0x9a8   :  { %v663_v57 = vmul.f32 %v2615_v53, %v573_v40 }
 0xa08   :  { %v666_v55 = vpop.permute.xlu0 %665 }
 0xa09   :  { %v668_v56 = vmul.f32 %v2615_v53, %v666_v55 }
 0xa0b   :  { %670 = vrot.lane.b32.xlu1 %v668_v56, %s2809_s3 }
 0xa7d   :  { %v671_v58 = vpop.permute.xlu1 %670 }
 0xa7e   :  { %v673_v59 = vadd.f32 %v671_v58, %v663_v57  ;;  %v3125_v58 = vld [vmem:[#allocation5 + $0x18] sm:$0xff] }
 0xa80   :  { %2616 = vtanh.f32 %v673_v59 }
 0xa8d   :  { %v2617_v60 = vpop.eup %2616 }
 0xa8e   :  { %676 = vrot.lane.b32.xlu0 %v2617_v60, %s2808_s29  ;;  %v3132_v60 = vld [vmem:[#allocation5 + $0x8] sm:$0xff] }
 0xb00   :  { %v677_v61 = vpop.permute.xlu0 %676 }
 0xb01   :  { %v679_v62 = vmul.f32 %v2615_v53, %v677_v61  ;;  %v3136_v61 = vld [vmem:[#allocation5] sm:$0xff] }
 0xb03   :  { %681 = vrot.lane.b32.xlu1 %v679_v62, %s2809_s3 }
 0xb75   :  { %v3069_v63 = vpop.permute.xlu1 %681 }
 0xb76   :  { %2402 = vmatmul.mubr.msk.f32.vlgmr.msra.gmra.mxu0 %vm281_vm9, %v3069_v63 }
 0xb77   :  { %2416 = vmatpush3.msra.mxu0 %v2924_v20  ;;  %2423 = vmatprep.mubr.msk.f32.mxu0 %vm2807_vm8, %v2806_v11 }
 0xb78   :  { %2417 = vmatprep.subr.mxu0 %v2806_v11 }
 0xb79   :  { %2418 = vmatpush3.msra.mxu0 %v2932_v23 }
 0xb7a   :  { %2419 = vmatprep.subr.mxu0 %v2806_v11 }
 0xb7b   :  { %2420 = vmatpush3.msra.mxu0 %v2945_v28 }
 0xb7c   :  { %2421 = vmatprep.subr.mxu0 %v2806_v11 }
 0xb7d   :  { %2422 = vmatpush3.msra.mxu0 %v2953_v29 }
 0xb7e   :  { %2437 = vmatprep.subr.mxu0 %v1083_v36 }
 0xc36   :  { %v751_v1 = vpop.f32.mrf.mxu0 }
 0xc37   :  { %v755_v2 = vadd.f32 %v751_v1, %v259_v0  ;;  %v274_v1 = vadd.f32 %v2984_v33, %v2989_v34 }
 0xc38   :  { %v2403_v3 = vpop.f32.mrf.mxu0 }
 0xc39   :  { %2618 = vtanh.f32 %v755_v2  ;;  %v2173_v5 = vmul.f32 -1.442695, %v755_v2 }
 0xc3b   :  { %2620 = vpow2.f32 %v2173_v5 }
 0xc46   :  { %v2619_v4 = vpop.eup %2618 }
 0xc47   :  { %765 = vrot.lane.b32.xlu0 %v2619_v4, %s2808_s29 }
 0xc48   :  { %v2621_v6 = vpop.eup %2620 }
 0xc49   :  { %v759_v7 = vadd.f32 1.0, %v2621_v6 }
 0xc4b   :  { %2622 = vrcp.f32 %v759_v7  ;;  %v3172_v7 = vld [vmem:[%s3339_s6] ss:$0 sm:$0xff] }
 0xc58   :  { %v2623_v8 = vpop.eup %2622 }
 0xc59   :  { %v763_v12 = vmul.f32 %v2623_v8, %v673_v59  ;;  %v3128_v59 = vld [vmem:[#allocation5 + $0x10] sm:$0xff] }
 0xcb9   :  { %v766_v9 = vpop.permute.xlu0 %765 }
 0xcba   :  { %v768_v10 = vmul.f32 %v2623_v8, %v766_v9 }
 0xcbc   :  { %770 = vrot.lane.b32.xlu1 %v768_v10, %s2809_s3 }
 0xd2e   :  { %v771_v14 = vpop.permute.xlu1 %770 }
 0xd2f   :  { %v773_v31 = vadd.f32 %v771_v14, %v763_v12 }
 0xd31   :  { %2624 = vtanh.f32 %v773_v31 }
 0xd3e   :  { %v2625_v15 = vpop.eup %2624 }
 0xd3f   :  { %776 = vrot.lane.b32.xlu0 %v2625_v15, %s2808_s29 }
 0xdb1   :  { %v777_v13 = vpop.permute.xlu0 %776 }
 0xdb2   :  { %v779_v17 = vmul.f32 %v2623_v8, %v777_v13 }
 0xdb4   :  { %781 = vrot.lane.b32.xlu1 %v779_v17, %s2809_s3 }
 0xe26   :  { %v782_v18 = vpop.permute.xlu1 %781 }
 0xe27   :  { %2413 = vmatmul.mubr.msk.f32.vlgmr.msra.gmra.mxu1 %vm281_vm9, %v782_v18 }
 0xe28   :  { %2427 = vmatpush3.msra.mxu1 %v2924_v20  ;;  %2434 = vmatprep.mubr.msk.f32.mxu1 %vm2807_vm8, %v2806_v11  ;;  %v264_v20 = vadd.f32 %v2980_v30, %v2989_v34 }
 0xe29   :  { %2428 = vmatprep.subr.mxu1 %v2806_v11 }
 0xe2a   :  { %2429 = vmatpush3.msra.mxu1 %v2932_v23 }
 0xe2b   :  { %2430 = vmatprep.subr.mxu1 %v2806_v11 }
 0xe2c   :  { %2431 = vmatpush3.msra.mxu1 %v2945_v28 }
 0xe2d   :  { %2432 = vmatprep.subr.mxu1 %v2806_v11 }
 0xe2e   :  { %2433 = vmatpush3.msra.mxu1 %v2953_v29 }
 0xe2f   :  { %2457 = vmatprep.subr.mxu1 %v2806_v11 }
 0xee7   :  { %v851_v19 = vpop.f32.mrf.mxu1 }
 0xee8   :  { %v855_v21 = vadd.f32 %v851_v19, %v264_v20 }
 0xee9   :  { %v2414_v22 = vpop.f32.mrf.mxu1 }
 0xeea   :  { %2626 = vtanh.f32 %v855_v21  ;;  %v2175_v23 = vmul.f32 -1.442695, %v855_v21 }
 0xeec   :  { %2628 = vpow2.f32 %v2175_v23 }
 0xef7   :  { %v2627_v24 = vpop.eup %2626 }
 0xef8   :  { %865 = vrot.lane.b32.xlu0 %v2627_v24, %s2808_s29 }
 0xef9   :  { %v2629_v25 = vpop.eup %2628 }
 0xefa   :  { %v859_v28 = vadd.f32 1.0, %v2629_v25 }
 0xefc   :  { %2630 = vrcp.f32 %v859_v28 }
 0xf09   :  { %v2631_v26 = vpop.eup %2630 }
 0xf0a   :  { %v863_v32 = vmul.f32 %v2631_v26, %v773_v31 }
 0xf6a   :  { %v866_v27 = vpop.permute.xlu0 %865 }
 0xf6b   :  { %v868_v29 = vmul.f32 %v2631_v26, %v866_v27 }
 0xf6d   :  { %870 = vrot.lane.b32.xlu1 %v868_v29, %s2809_s3 }
 0xfdf   :  { %v871_v35 = vpop.permute.xlu1 %870 }
 0xfe0   :  { %v873_v30 = vadd.f32 %v871_v35, %v863_v32 }
 0xfe2   :  { %2632 = vtanh.f32 %v873_v30 }
 0xfef   :  { %v2633_v38 = vpop.eup %2632 }
 0xff0   :  { %876 = vrot.lane.b32.xlu0 %v2633_v38, %s2808_s29 }
0x1062   :  { %v877_v39 = vpop.permute.xlu0 %876 }
0x1063   :  { %v879_v40 = vmul.f32 %v2631_v26, %v877_v39 }
0x1065   :  { %881 = vrot.lane.b32.xlu1 %v879_v40, %s2809_s3 }
0x10d7   :  { %v882_v41 = vpop.permute.xlu1 %881 }
0x10d8   :  { %2424 = vmatmul.mubr.msk.f32.vlgmr.msra.gmra.mxu0 %vm281_vm9, %v882_v41 }
0x10d9   :  { %2438 = vmatpush3.msra.mxu0 %v1083_v36  ;;  %2445 = vmatprep.mubr.msk.f32.mxu0 %vm281_vm9, %v2998_v54  ;;  %v269_v54 = vadd.f32 %v2989_v34, %v2992_v37 }
0x10da   :  { %2439 = vmatprep.subr.mxu0 %v1082_v42 }
0x10db   :  { %2440 = vmatpush3.msra.mxu0 %v1082_v42 }
0x10dc   :  { %2441 = vmatprep.subr.mxu0 %v1081_v43 }
0x10dd   :  { %2442 = vmatpush3.msra.mxu0 %v1081_v43 }
0x10de   :  { %2443 = vmatprep.subr.mxu0 %v1080_v45 }
0x10df   :  { %2444 = vmatpush3.msra.mxu0 %v1080_v45 }
0x10e0   :  { %2446 = vmatmul.mubr.msk.f32.vlgmr.msra.gmra.mxu0 %vm281_vm9, %v3031_v16  ;;  %2479 = vmatprep.subr.mxu0 %v2806_v11 }
0x10e1   :  { %2448 = vmatprep.mubr.msk.f32.mxu0 %vm281_vm9, %v3050_v44  ;;  %2480 = vmatpush3.msra.mxu0 %v3125_v58 }
0x10e2   :  { %2481 = vmatprep.subr.mxu0 %v2806_v11 }
0x10e3   :  { %2482 = vmatpush3.msra.mxu0 %v3128_v59 }
0x10e4   :  { %2449 = vmatmul.mubr.msk.f32.gmra.mxu0 %vm281_vm9, %v3069_v63  ;;  %2483 = vmatprep.subr.mxu0 %v2806_v11 }
0x10e5   :  { %2451 = vmatprep.mubr.msk.f32.mxu0 %vm281_vm9, %v782_v18  ;;  %2484 = vmatpush3.msra.mxu0 %v3132_v60 }
0x10e6   :  { %2485 = vmatprep.subr.mxu0 %v2806_v11 }
0x10e7   :  { %2486 = vmatpush3.msra.mxu0 %v3136_v61 }
0x10e8   :  { %2452 = vmatmul.mubr.msk.f32.gmra.mxu0 %vm281_vm9, %v882_v41  ;;  %2501 = vmatprep.subr.mxu0 %v2806_v11 }
0x1198   :  { %v951_v46 = vpop.f32.mrf.mxu0 }
0x1199   :  { %v955_v47 = vadd.f32 %v951_v46, %v269_v54 }
0x119a   :  { %v2425_v48 = vpop.f32.mrf.mxu0 }
0x119b   :  { %2634 = vtanh.f32 %v955_v47  ;;  %v2177_v49 = vmul.f32 -1.442695, %v955_v47 }
0x119d   :  { %2636 = vpow2.f32 %v2177_v49 }
0x11a0   :  { %v3167_v2 = vpop.f32.mrf.mxu0 }
0x11a1   :  { %v1168_v42 = vadd.f32 %v3167_v2, %v3172_v7 }
0x11a2   :  { %v1162_v6 = vpop.f32.mrf.mxu0 }
0x11a3   :  { %v1163_v8 = vadd.f32 %v3172_v7, %v1162_v6 }
0x11a8   :  { %v2635_v16 = vpop.eup %2634 }
0x11a9   :  { %965 = vrot.lane.b32.xlu0 %v2635_v16, %s2808_s29 }
0x11aa   :  { %v2637_v44 = vpop.eup %2636 }
0x11ab   :  { %v959_v50 = vadd.f32 1.0, %v2637_v44 }
0x11ad   :  { %2638 = vrcp.f32 %v959_v50 }
0x11ba   :  { %v2639_v51 = vpop.eup %2638 }
0x11bb   :  { %v963_v55 = vmul.f32 %v2639_v51, %v873_v30 }
0x121b   :  { %v966_v52 = vpop.permute.xlu0 %965 }
0x121c   :  { %v968_v53 = vmul.f32 %v2639_v51, %v966_v52 }
0x121e   :  { %970 = vrot.lane.b32.xlu1 %v968_v53, %s2809_s3 }
0x1290   :  { %v971_v56 = vpop.permute.xlu1 %970 }
0x1291   :  { %v3121_v37 = vadd.f32 %v971_v56, %v963_v55 }
0x1293   :  { %2640 = vtanh.f32 %v3121_v37 }
0x12a0   :  { %v2641_v57 = vpop.eup %2640 }
0x12a1   :  { %976 = vrot.lane.b32.xlu0 %v2641_v57, %s2808_s29 }
0x1313   :  { %v977_v62 = vpop.permute.xlu0 %976 }
0x1314   :  { %v979_v63 = vmul.f32 %v2639_v51, %v977_v62 }
0x1316   :  { %981 = vrot.lane.b32.xlu1 %v979_v63, %s2809_s3  ;;  %v2450_v63 = vpop.f32.mrf.mxu0 }
0x1388   :  { %v982_v0 = vpop.permute.xlu1 %981 }
0x1389   :  { %2435 = vmatmul.mubr.msk.f32.vlgmr.msra.gmra.mxu1 %vm281_vm9, %v982_v0  ;;  %2454 = vmatprep.mubr.msk.f32.mxu0 %vm281_vm9, %v982_v0  ;;  %v1172_v0 = vpop.f32.mrf.mxu0 }
0x138a   :  { %2458 = vmatpush3.msra.mxu1 %v3125_v58  ;;  %2465 = vmatprep.mubr.msk.f32.mxu1 %vm2807_vm8, %v2806_v11 }
0x138b   :  { %2459 = vmatprep.subr.mxu1 %v2806_v11 }
0x138c   :  { %2460 = vmatpush3.msra.mxu1 %v3128_v59 }
0x138d   :  { %2461 = vmatprep.subr.mxu1 %v2806_v11 }
0x138e   :  { %2462 = vmatpush3.msra.mxu1 %v3132_v60 }
0x138f   :  { %2463 = vmatprep.subr.mxu1 %v2806_v11 }
0x1390   :  { %2464 = vmatpush3.msra.mxu1 %v3136_v61 }
0x1391   :  { %2466 = vmatmul.mubr.f32.vlgmr.msra.gmra.mxu1 %v2806_v11  ;;  %2468 = vmatprep.subr.mxu1 %v2806_v11 }
0x1392   :  { %2469 = vmatpush3.msra.mxu1 %v3125_v58  ;;  %2476 = vmatprep.mubr.msk.f32.mxu1 %vm2807_vm8, %v2806_v11 }
0x1393   :  { %2470 = vmatprep.subr.mxu1 %v2806_v11 }
0x1394   :  { %2471 = vmatpush3.msra.mxu1 %v3128_v59 }
0x1395   :  { %2472 = vmatprep.subr.mxu1 %v2806_v11 }
0x1396   :  { %2473 = vmatpush3.msra.mxu1 %v3132_v60 }
0x1397   :  { %2474 = vmatprep.subr.mxu1 %v2806_v11 }
0x1398   :  { %2475 = vmatpush3.msra.mxu1 %v3136_v61 }
0x1399   :  { %2490 = vmatprep.subr.mxu1 %v2806_v11 }
0x1449   :  { %v1051_v3 = vpop.f32.mrf.mxu1 }
0x144a   :  { %v1055_v4 = vadd.f32 %v1051_v3, %v274_v1  ;;  %v3221_v1 = vpop.f32.mrf.mxu0 }
0x144b   :  { %v2436_v5 = vpop.f32.mrf.mxu1 }
0x144c   :  { %v2179_v24 = vmul.f32 -1.442695, %v1055_v4  ;;  %v3223_v2 = vpop.f32.mrf.mxu0  ;;  %v1173_v5 = vadd.f32 %v3172_v7, %v1172_v0 }
0x1451   :  { %v1271_v9 = vpop.f32.mrf.mxu1 }
0x1452   :  { %v1275_v10 = vadd.f32 %v1271_v9, %v1163_v8 }
0x1453   :  { %v2467_v12 = vpop.f32.mrf.mxu1 }
0x1454   :  { %2642 = vtanh.f32 %v1275_v10  ;;  %v2189_v33 = vmul.f32 -1.442695, %v1275_v10 }
0x1456   :  { %2644 = vpow2.f32 %v2189_v33 }
0x1461   :  { %v2643_v14 = vpop.eup %2642 }
0x1462   :  { %1285 = vrot.lane.b32.xlu0 %v2643_v14, %s2808_s29 }
0x1463   :  { %v2645_v34 = vpop.eup %2644 }
0x1464   :  { %v1279_v31 = vadd.f32 1.0, %v2645_v34 }
0x1466   :  { %2646 = vrcp.f32 %v1279_v31 }
0x1473   :  { %v2647_v15 = vpop.eup %2646 }
0x1474   :  { %v1283_v18 = vmul.f32 0.0, %v2647_v15 }
0x14d4   :  { %v1286_v13 = vpop.permute.xlu0 %1285 }
0x14d5   :  { %v1288_v17 = vmul.f32 %v2647_v15, %v1286_v13 }
0x14d7   :  { %1290 = vrot.lane.b32.xlu1 %v1288_v17, %s2809_s3 }
0x1549   :  { %v1291_v20 = vpop.permute.xlu1 %1290 }
0x154a   :  { %v1293_v19 = vadd.f32 %v1291_v20, %v1283_v18 }
0x154c   :  { %2648 = vtanh.f32 %v1293_v19 }
0x154d   :  { %2650 = vtanh.f32 %v1055_v4 }
0x154e   :  { %2652 = vpow2.f32 %v2179_v24  ;;  %v1178_v24 = vadd.f32 %v2450_v63, %v3172_v7 }
0x1559   :  { %v2649_v21 = vpop.eup %2648 }
0x155a   :  { %1296 = vrot.lane.b32.xlu0 %v2649_v21, %s2808_s29  ;;  %v2651_v22 = vpop.eup %2650 }
0x155b   :  { %v2653_v23 = vpop.eup %2652 }
0x155c   :  { %v1059_v25 = vadd.f32 1.0, %v2653_v23 }
0x155e   :  { %1065 = vrot.lane.b32.xlu0 %v2651_v22, %s2808_s29  ;;  %2654 = vrcp.f32 %v1059_v25 }
0x156b   :  { %v2655_v27 = vpop.eup %2654 }
0x156c   :  { %v1063_v30 = vmul.f32 %v2655_v27, %v3121_v37 }
0x15cc   :  { %v1297_v28 = vpop.permute.xlu0 %1296 }
0x15cd   :  { %v1299_v26 = vmul.f32 %v2647_v15, %v1297_v28 }
0x15cf   :  { %1301 = vrot.lane.b32.xlu1 %v1299_v26, %s2809_s3 }
0x15d0   :  { %v1066_v29 = vpop.permute.xlu0 %1065 }
0x15d1   :  { %v1068_v32 = vmul.f32 %v2655_v27, %v1066_v29 }
0x15d3   :  { %1070 = vrot.lane.b32.xlu0 %v1068_v32, %s2809_s3 }
0x1641   :  { %v3181_v35 = vpop.permute.xlu1 %1301 }
0x1642   :  { %2477 = vmatmul.mubr.msk.f32.vlgmr.msra.gmra.mxu1 %vm281_vm9, %v3181_v35 }
0x1643   :  { %2491 = vmatpush3.msra.mxu1 %v3125_v58  ;;  %2498 = vmatprep.mubr.msk.f32.mxu1 %vm2807_vm8, %v2806_v11 }
0x1644   :  { %2492 = vmatprep.subr.mxu1 %v2806_v11 }
0x1645   :  { %v1071_v36 = vpop.permute.xlu0 %1070  ;;  %2493 = vmatpush3.msra.mxu1 %v3128_v59 }
0x1646   :  { %v1073_v38 = vadd.f32 %v1071_v36, %v1063_v30  ;;  %2494 = vmatprep.subr.mxu1 %v2806_v11 }
0x1647   :  { %2495 = vmatpush3.msra.mxu1 %v3132_v60 }
0x1648   :  { %2656 = vtanh.f32 %v1073_v38  ;;  %2496 = vmatprep.subr.mxu1 %v2806_v11 }
0x1649   :  { %2497 = vmatpush3.msra.mxu1 %v3136_v61 }
0x164a   :  { %2512 = vmatprep.subr.mxu1 %v2806_v11 }
0x1655   :  { %v2657_v39 = vpop.eup %2656 }
0x1656   :  { %1076 = vrot.lane.b32.xlu0 %v2657_v39, %s2808_s29 }
0x16c8   :  { %v1077_v40 = vpop.permute.xlu0 %1076 }
0x16c9   :  { %v1079_v41 = vmul.f32 %v2655_v27, %v1077_v40 }
0x16cb   :  { %1092 = vrot.lane.b32.xlu0 %v1079_v41, %s2809_s3 }
0x1702   :  { %v1371_v43 = vpop.f32.mrf.mxu1 }
0x1703   :  { %v1375_v45 = vadd.f32 %v1371_v43, %v1168_v42 }
0x1704   :  { %v2478_v54 = vpop.f32.mrf.mxu1 }
0x1705   :  { %2658 = vtanh.f32 %v1375_v45  ;;  %v2191_v48 = vmul.f32 -1.442695, %v1375_v45 }
0x1707   :  { %2660 = vpow2.f32 %v2191_v48 }
0x1712   :  { %v2659_v46 = vpop.eup %2658 }
0x1713   :  { %1385 = vrot.lane.b32.xlu1 %v2659_v46, %s2808_s29  ;;  %v1183_v46 = vadd.f32 %v3172_v7, %v3223_v2 }
0x1714   :  { %v2661_v16 = vpop.eup %2660 }
0x1715   :  { %v1379_v49 = vadd.f32 1.0, %v2661_v16 }
0x1717   :  { %2662 = vrcp.f32 %v1379_v49 }
0x1724   :  { %v2663_v44 = vpop.eup %2662 }
0x1725   :  { %v1383_v52 = vmul.f32 %v2663_v44, %v1293_v19 }
0x173d   :  { %v1093_v47 = vpop.permute.xlu0 %1092 }
0x173e   :  { %2455 = vmatmul.mubr.msk.f32.gmra.mxu0 %vm281_vm9, %v1093_v47 }
0x173f   :  { %2487 = vmatprep.mubr.msk.f32.mxu0 %vm2807_vm8, %v2806_v11 }
0x1785   :  { %v1386_v50 = vpop.permute.xlu1 %1385 }
0x1786   :  { %v1388_v51 = vmul.f32 %v2663_v44, %v1386_v50 }
0x1788   :  { %1390 = vrot.lane.b32.xlu1 %v1388_v51, %s2809_s3 }
0x17fa   :  { %v1391_v53 = vpop.permute.xlu1 %1390 }
0x17fb   :  { %v1393_v55 = vadd.f32 %v1391_v53, %v1383_v52 }
0x17fd   :  { %2664 = vtanh.f32 %v1393_v55 }
0x17fe   :  { %v3225_v3 = vpop.f32.mrf.mxu0 }
0x1800   :  { %v3227_v4 = vpop.f32.mrf.mxu0 }
0x180a   :  { %v2665_v56 = vpop.eup %2664 }
0x180b   :  { %1396 = vrot.lane.b32.xlu1 %v2665_v56, %s2808_s29 }
0x187d   :  { %v1397_v37 = vpop.permute.xlu1 %1396 }
0x187e   :  { %v1399_v57 = vmul.f32 %v2663_v44, %v1397_v37 }
0x1880   :  { %1401 = vrot.lane.b32.xlu1 %v1399_v57, %s2809_s3 }
0x18f2   :  { %v3207_v62 = vpop.permute.xlu1 %1401 }
0x18f3   :  { %2488 = vmatmul.mubr.msk.f32.vlgmr.msra.gmra.mxu0 %vm281_vm9, %v3207_v62 }
0x18f4   :  { %2502 = vmatpush3.msra.mxu0 %v3125_v58  ;;  %2509 = vmatprep.mubr.msk.f32.mxu0 %vm2807_vm8, %v2806_v11 }
0x18f5   :  { %2503 = vmatprep.subr.mxu0 %v2806_v11 }
0x18f6   :  { %2504 = vmatpush3.msra.mxu0 %v3128_v59 }
0x18f7   :  { %2505 = vmatprep.subr.mxu0 %v2806_v11 }
0x18f8   :  { %2506 = vmatpush3.msra.mxu0 %v3132_v60 }
0x18f9   :  { %2507 = vmatprep.subr.mxu0 %v2806_v11 }
0x18fa   :  { %2508 = vmatpush3.msra.mxu0 %v3136_v61 }
0x18fb   :  { %2523 = vmatprep.subr.mxu0 %v2806_v11 }
0x19b3   :  { %v1471_v6 = vpop.f32.mrf.mxu0 }
0x19b4   :  { %v1475_v8 = vadd.f32 %v1471_v6, %v1173_v5  ;;  %v1188_v6 = vadd.f32 %v3221_v1, %v3172_v7 }
0x19b5   :  { %v2489_v9 = vpop.f32.mrf.mxu0 }
0x19b6   :  { %2666 = vtanh.f32 %v1475_v8  ;;  %v2193_v12 = vmul.f32 -1.442695, %v1475_v8 }
0x19b8   :  { %2668 = vpow2.f32 %v2193_v12 }
0x19c3   :  { %v2667_v10 = vpop.eup %2666 }
0x19c4   :  { %1485 = vrot.lane.b32.xlu0 %v2667_v10, %s2808_s29 }
0x19c5   :  { %v2669_v14 = vpop.eup %2668 }
0x19c6   :  { %v1479_v33 = vadd.f32 1.0, %v2669_v14 }
0x19c8   :  { %2670 = vrcp.f32 %v1479_v33 }
0x19d5   :  { %v2671_v34 = vpop.eup %2670 }
0x19d6   :  { %v1483_v13 = vmul.f32 %v2671_v34, %v1393_v55 }
0x1a36   :  { %v1486_v31 = vpop.permute.xlu0 %1485 }
0x1a37   :  { %v1488_v15 = vmul.f32 %v2671_v34, %v1486_v31  ;;  %v2003_v31 = vld [vmem:[#allocation7 + $0x18] sm:$0xff] }
0x1a39   :  { %1490 = vrot.lane.b32.xlu1 %v1488_v15, %s2809_s3 }
0x1aab   :  { %v1491_v17 = vpop.permute.xlu1 %1490 }
0x1aac   :  { %v1493_v18 = vadd.f32 %v1491_v17, %v1483_v13 }
0x1aae   :  { %2672 = vtanh.f32 %v1493_v18 }
0x1abb   :  { %v2673_v20 = vpop.eup %2672 }
0x1abc   :  { %1496 = vrot.lane.b32.xlu0 %v2673_v20, %s2808_s29  ;;  %v2002_v20 = vld [vmem:[#allocation7 + $0x10] sm:$0xff] }
0x1b2e   :  { %v1497_v19 = vpop.permute.xlu0 %1496 }
0x1b2f   :  { %v1499_v21 = vmul.f32 %v2671_v34, %v1497_v19  ;;  %v2001_v19 = vld [vmem:[#allocation7 + $0x8] sm:$0xff] }
0x1b31   :  { %1501 = vrot.lane.b32.xlu1 %v1499_v21, %s2809_s3  ;;  %v2000_v21 = vld [vmem:[#allocation7] sm:$0xff] }
0x1ba3   :  { %v3234_v22 = vpop.permute.xlu1 %1501 }
0x1ba4   :  { %2499 = vmatmul.mubr.msk.f32.vlgmr.msra.gmra.mxu1 %vm281_vm9, %v3234_v22 }
0x1ba5   :  { %2513 = vmatpush3.msra.mxu1 %v3125_v58  ;;  %2520 = vmatprep.mubr.msk.f32.mxu1 %vm2807_vm8, %v2806_v11 }
0x1ba6   :  { %2514 = vmatprep.subr.mxu1 %v2806_v11 }
0x1ba7   :  { %2515 = vmatpush3.msra.mxu1 %v3128_v59 }
0x1ba8   :  { %2516 = vmatprep.subr.mxu1 %v2806_v11 }
0x1ba9   :  { %2517 = vmatpush3.msra.mxu1 %v3132_v60 }
0x1baa   :  { %2518 = vmatprep.subr.mxu1 %v2806_v11 }
0x1bab   :  { %2519 = vmatpush3.msra.mxu1 %v3136_v61 }
0x1bac   :  { %2534 = vmatprep.subr.mxu1 %v2806_v11 }
0x1c64   :  { %v1571_v23 = vpop.f32.mrf.mxu1 }
0x1c65   :  { %v1575_v25 = vadd.f32 %v1571_v23, %v1178_v24 }
0x1c66   :  { %v2500_v28 = vpop.f32.mrf.mxu1 }
0x1c67   :  { %2674 = vtanh.f32 %v1575_v25  ;;  %v2195_v27 = vmul.f32 -1.442695, %v1575_v25 }
0x1c69   :  { %2676 = vpow2.f32 %v2195_v27 }
0x1c74   :  { %v2675_v26 = vpop.eup %2674 }
0x1c75   :  { %1585 = vrot.lane.b32.xlu0 %v2675_v26, %s2808_s29 }
0x1c76   :  { %v2677_v29 = vpop.eup %2676 }
0x1c77   :  { %v1579_v32 = vadd.f32 1.0, %v2677_v29 }
0x1c79   :  { %2678 = vrcp.f32 %v1579_v32 }
0x1c86   :  { %v2679_v30 = vpop.eup %2678 }
0x1c87   :  { %v1583_v39 = vmul.f32 %v2679_v30, %v1493_v18 }
0x1ce7   :  { %v1586_v36 = vpop.permute.xlu0 %1585 }
0x1ce8   :  { %v1588_v38 = vmul.f32 %v2679_v30, %v1586_v36 }
0x1cea   :  { %1590 = vrot.lane.b32.xlu1 %v1588_v38, %s2809_s3 }
0x1d5c   :  { %v1591_v40 = vpop.permute.xlu1 %1590 }
0x1d5d   :  { %v1593_v41 = vadd.f32 %v1591_v40, %v1583_v39 }
0x1d5f   :  { %2680 = vtanh.f32 %v1593_v41 }
0x1d6c   :  { %v2681_v42 = vpop.eup %2680 }
0x1d6d   :  { %1596 = vrot.lane.b32.xlu0 %v2681_v42, %s2808_s29 }
0x1ddf   :  { %v1597_v43 = vpop.permute.xlu0 %1596 }
0x1de0   :  { %v1599_v45 = vmul.f32 %v2679_v30, %v1597_v43 }
0x1de2   :  { %1601 = vrot.lane.b32.xlu1 %v1599_v45, %s2809_s3 }
0x1e54   :  { %v3253_v54 = vpop.permute.xlu1 %1601 }
0x1e55   :  { %2510 = vmatmul.mubr.msk.f32.vlgmr.msra.gmra.mxu0 %vm281_vm9, %v3253_v54 }
0x1e56   :  { %2524 = vmatpush3.msra.mxu0 %v3125_v58  ;;  %2531 = vmatprep.mubr.msk.f32.mxu0 %vm2807_vm8, %v2806_v11 }
0x1e57   :  { %2525 = vmatprep.subr.mxu0 %v2806_v11 }
0x1e58   :  { %2526 = vmatpush3.msra.mxu0 %v3128_v59 }
0x1e59   :  { %2527 = vmatprep.subr.mxu0 %v2806_v11 }
0x1e5a   :  { %2528 = vmatpush3.msra.mxu0 %v3132_v60 }
0x1e5b   :  { %2529 = vmatprep.subr.mxu0 %v2806_v11 }
0x1e5c   :  { %2530 = vmatpush3.msra.mxu0 %v3136_v61 }
0x1e5d   :  { %2545 = vmatprep.subr.mxu0 %v2003_v31 }
0x1f15   :  { %v1671_v47 = vpop.f32.mrf.mxu0 }
0x1f16   :  { %v1675_v48 = vadd.f32 %v1671_v47, %v1183_v46 }
0x1f17   :  { %v2511_v16 = vpop.f32.mrf.mxu0 }
0x1f18   :  { %2682 = vtanh.f32 %v1675_v48  ;;  %v2197_v44 = vmul.f32 -1.442695, %v1675_v48 }
0x1f1a   :  { %2684 = vpow2.f32 %v2197_v44 }
0x1f25   :  { %v2683_v49 = vpop.eup %2682 }
0x1f26   :  { %1685 = vrot.lane.b32.xlu0 %v2683_v49, %s2808_s29 }
0x1f27   :  { %v2685_v50 = vpop.eup %2684 }
0x1f28   :  { %v1679_v51 = vadd.f32 1.0, %v2685_v50 }
0x1f2a   :  { %2686 = vrcp.f32 %v1679_v51 }
0x1f37   :  { %v2687_v52 = vpop.eup %2686 }
0x1f38   :  { %v1683_v56 = vmul.f32 %v2687_v52, %v1593_v41 }
0x1f98   :  { %v1686_v53 = vpop.permute.xlu0 %1685 }
0x1f99   :  { %v1688_v55 = vmul.f32 %v2687_v52, %v1686_v53  ;;  %v1198_v53 = vadd.f32 %v3225_v3, %v3172_v7 }
0x1f9b   :  { %1690 = vrot.lane.b32.xlu1 %v1688_v55, %s2809_s3 }
0x200d   :  { %v1691_v37 = vpop.permute.xlu1 %1690 }
0x200e   :  { %v1693_v57 = vadd.f32 %v1691_v37, %v1683_v56 }
0x2010   :  { %2688 = vtanh.f32 %v1693_v57 }
0x201d   :  { %v2689_v63 = vpop.eup %2688 }
0x201e   :  { %1696 = vrot.lane.b32.xlu0 %v2689_v63, %s2808_s29 }
0x2090   :  { %v1697_v0 = vpop.permute.xlu0 %1696 }
0x2091   :  { %v1699_v2 = vmul.f32 %v2687_v52, %v1697_v0 }
0x2093   :  { %1701 = vrot.lane.b32.xlu1 %v1699_v2, %s2809_s3 }
0x2105   :  { %v1702_v5 = vpop.permute.xlu1 %1701 }
0x2106   :  { %2521 = vmatmul.mubr.msk.f32.vlgmr.msra.gmra.mxu1 %vm281_vm9, %v1702_v5 }
0x2107   :  { %2535 = vmatpush3.msra.mxu1 %v3125_v58  ;;  %2542 = vmatprep.mubr.msk.f32.mxu1 %vm2807_vm8, %v2806_v11 }
0x2108   :  { %2536 = vmatprep.subr.mxu1 %v2806_v11 }
0x2109   :  { %2537 = vmatpush3.msra.mxu1 %v3128_v59 }
0x210a   :  { %2538 = vmatprep.subr.mxu1 %v2806_v11 }
0x210b   :  { %2539 = vmatpush3.msra.mxu1 %v3132_v60 }
0x210c   :  { %2540 = vmatprep.subr.mxu1 %v2806_v11 }
0x210d   :  { %2541 = vmatpush3.msra.mxu1 %v3136_v61 }
0x21c6   :  { %v1771_v8 = vpop.f32.mrf.mxu1 }
0x21c7   :  { %v1775_v58 = vadd.f32 %v1771_v8, %v1188_v6 }
0x21c8   :  { %v2522_v9 = vpop.f32.mrf.mxu1 }
0x21c9   :  { %2690 = vtanh.f32 %v1775_v58  ;;  %v2199_v12 = vmul.f32 -1.442695, %v1775_v58 }
0x21cb   :  { %2692 = vpow2.f32 %v2199_v12 }
0x21d6   :  { %v2691_v10 = vpop.eup %2690 }
0x21d7   :  { %1785 = vrot.lane.b32.xlu0 %v2691_v10, %s2808_s29 }
0x21d8   :  { %v2693_v59 = vpop.eup %2692 }
0x21d9   :  { %v1779_v14 = vadd.f32 1.0, %v2693_v59 }
0x21db   :  { %2694 = vrcp.f32 %v1779_v14 }
0x21e8   :  { %v2695_v60 = vpop.eup %2694 }
0x21e9   :  { %v1783_v61 = vmul.f32 %v2695_v60, %v1693_v57 }
0x2249   :  { %v1786_v33 = vpop.permute.xlu0 %1785 }
0x224a   :  { %v1788_v11 = vmul.f32 %v2695_v60, %v1786_v33 }
0x224c   :  { %1790 = vrot.lane.b32.xlu1 %v1788_v11, %s2809_s3 }
0x22be   :  { %v1791_v34 = vpop.permute.xlu1 %1790 }
0x22bf   :  { %v1793_v1 = vadd.f32 %v1791_v34, %v1783_v61 }
0x22c1   :  { %2696 = vtanh.f32 %v1793_v1 }
0x22ce   :  { %v2697_v15 = vpop.eup %2696 }
0x22cf   :  { %1796 = vrot.lane.b32.xlu0 %v2697_v15, %s2808_s29 }
0x2341   :  { %v1797_v13 = vpop.permute.xlu0 %1796 }
0x2342   :  { %v1799_v17 = vmul.f32 %v2695_v60, %v1797_v13 }
0x2344   :  { %1801 = vrot.lane.b32.xlu1 %v1799_v17, %s2809_s3 }
0x23b6   :  { %v1802_v18 = vpop.permute.xlu1 %1801 }
0x23b7   :  { %2532 = vmatmul.mubr.msk.f32.vlgmr.msra.gmra.mxu0 %vm281_vm9, %v1802_v18 }
0x23b8   :  { %2546 = vmatpush3.msra.mxu0 %v2003_v31  ;;  %2553 = vmatprep.mubr.msk.f32.mxu0 %vm281_vm9, %v3181_v35  ;;  %v1193_v35 = vadd.f32 %v3172_v7, %v3227_v4 }
0x23b9   :  { %2547 = vmatprep.subr.mxu0 %v2002_v20 }
0x23ba   :  { %2548 = vmatpush3.msra.mxu0 %v2002_v20 }
0x23bb   :  { %2549 = vmatprep.subr.mxu0 %v2001_v19 }
0x23bc   :  { %2550 = vmatpush3.msra.mxu0 %v2001_v19 }
0x23bd   :  { %2551 = vmatprep.subr.mxu0 %v2000_v21 }
0x23be   :  { %2552 = vmatpush3.msra.mxu0 %v2000_v21 }
0x23bf   :  { %2554 = vmatmul.mubr.msk.f32.vlgmr.msra.gmra.mxu0 %vm281_vm9, %v3207_v62  ;;  %v3304_v62 = vld [vmem:[%s3341_s8] ss:$0 sm:$0xff]  ;;  %s2810_s8 = smov [#allocation8]  }
0x23c0   :  { %2556 = vmatprep.mubr.msk.f32.mxu0 %vm281_vm9, %v3234_v22  ;;  %s2134_s17 = sshll.u32 %s2810_s8, 4  ;;  %s2135_s17 = int_to_ptr.vmem [resolvable:$true] %s2134_s17 }
0x23c1   :  { %s2774_s18 = scalar_lea.vmem %s2135_s17, 1024  ;;  %p2779_p2 = scmp.lt.s32.totalorder %s2135_s17, %s2135_s17 }
0x23c2   :  { %p2775_p1 = scmp.ne.s32.totalorder %s2135_s17, %s2774_s18  ;;  %p2780_p3 = scmp.lt.s32.totalorder %s2774_s18, %s2774_s18 }
0x23c3   :  { %2557 = vmatmul.mubr.msk.f32.gmra.mxu0 %vm281_vm9, %v3253_v54 }
0x23c4   :  { %2559 = vmatprep.mubr.msk.f32.mxu0 %vm281_vm9, %v1702_v5  ;;  %p2781_p4 = por %p2780_p3, %p2779_p2 }
0x23c6   :  { %p2782_p5 = pnand %p2781_p4, %p2775_p1 }
0x23c7   :  { %2560 = vmatmul.mubr.msk.f32.gmra.mxu0 %vm281_vm9, %v1802_v18 }
0x2477   :  { %v1871_v24 = vpop.f32.mrf.mxu0 }
0x2478   :  { %v1875_v23 = vadd.f32 %v1871_v24, %v1193_v35 }
0x2479   :  { %v2533_v25 = vpop.f32.mrf.mxu0 }
0x247a   :  { %2698 = vtanh.f32 %v1875_v23  ;;  %v2201_v42 = vmul.f32 -1.442695, %v1875_v23 }
0x247c   :  { %2700 = vpow2.f32 %v2201_v42 }
0x247f   :  { %v2555_v22 = vpop.f32.mrf.mxu0 }
0x2480   :  { %v2088_v28 = vadd.f32 %v2555_v22, %v3304_v62 }
0x2481   :  { %v2082_v26 = vpop.f32.mrf.mxu0 }
0x2482   :  { %2122 = vst [vmem:[#allocation8 + $0x8] sm:$0xff] %v2088_v28  ;;  %v2083_v27 = vadd.f32 %v3304_v62, %v2082_v26 }
0x2483   :  { %v2558_v29 = vpop.f32.mrf.mxu0 }
0x2484   :  { %2121 = vst [vmem:[#allocation8] sm:$0xff] %v2083_v27  ;;  %v2098_v4 = vadd.f32 %v2558_v29, %v3304_v62 }
0x2485   :  { %v2092_v32 = vpop.f32.mrf.mxu0 }
0x2486   :  { %2124 = vst [vmem:[#allocation8 + $0x18] sm:$0xff] %v2098_v4  ;;  %v2093_v30 = vadd.f32 %v3304_v62, %v2092_v32 }
0x2487   :  { %v2699_v36 = vpop.eup %2698  ;;  %v2561_v38 = vpop.f32.mrf.mxu0 }
0x2488   :  { %2123 = vst [vmem:[#allocation8 + $0x10] sm:$0xff] %v2093_v30  ;;  %v2108_v39 = vadd.f32 %v2561_v38, %v3304_v62  ;;  %1885 = vrot.lane.b32.xlu0 %v2699_v36, %s2808_s29 }
0x2489   :  { %v2102_v40 = vpop.f32.mrf.mxu0  ;;  %v2701_v43 = vpop.eup %2700 }
0x248a   :  { %2126 = vst [vmem:[#allocation8 + $0x28] sm:$0xff] %v2108_v39  ;;  %v2103_v41 = vadd.f32 %v3304_v62, %v2102_v40  ;;  %v1879_v45 = vadd.f32 1.0, %v2701_v43 }
0x248c   :  { %2125 = vst [vmem:[#allocation8 + $0x20] sm:$0xff] %v2103_v41  ;;  %2702 = vrcp.f32 %v1879_v45 }
0x2499   :  { %v2703_v54 = vpop.eup %2702 }
0x249a   :  { %v1883_v48 = vmul.f32 %v2703_v54, %v1793_v1 }
0x24fa   :  { %v1886_v46 = vpop.permute.xlu0 %1885 }
0x24fb   :  { %v1888_v47 = vmul.f32 %v2703_v54, %v1886_v46 }
0x24fd   :  { %1890 = vrot.lane.b32.xlu1 %v1888_v47, %s2809_s3 }
0x256f   :  { %v1891_v16 = vpop.permute.xlu1 %1890 }
0x2570   :  { %v1893_v49 = vadd.f32 %v1891_v16, %v1883_v48 }
0x2572   :  { %2704 = vtanh.f32 %v1893_v49 }
0x257f   :  { %v2705_v44 = vpop.eup %2704 }
0x2580   :  { %1896 = vrot.lane.b32.xlu0 %v2705_v44, %s2808_s29 }
0x25f2   :  { %v1897_v50 = vpop.permute.xlu0 %1896 }
0x25f3   :  { %v1899_v51 = vmul.f32 %v2703_v54, %v1897_v50 }
0x25f5   :  { %1901 = vrot.lane.b32.xlu1 %v1899_v51, %s2809_s3 }
0x2667   :  { %v1902_v52 = vpop.permute.xlu1 %1901 }
0x2668   :  { %2543 = vmatmul.mubr.msk.f32.vlgmr.msra.gmra.mxu1 %vm281_vm9, %v1902_v52  ;;  %2562 = vmatprep.mubr.msk.f32.mxu0 %vm281_vm9, %v1902_v52 }
0x2728   :  { %v1971_v55 = vpop.f32.mrf.mxu1 }
0x2729   :  { %v1975_v56 = vadd.f32 %v1971_v55, %v1198_v53 }
0x272a   :  { %v2544_v37 = vpop.f32.mrf.mxu1 }
0x272b   :  { %2706 = vtanh.f32 %v1975_v56  ;;  %v2203_v63 = vmul.f32 -1.442695, %v1975_v56 }
0x272d   :  { %2708 = vpow2.f32 %v2203_v63 }
0x2738   :  { %v2707_v57 = vpop.eup %2706 }
0x2739   :  { %1985 = vrot.lane.b32.xlu0 %v2707_v57, %s2808_s29 }
0x273a   :  { %v2709_v0 = vpop.eup %2708 }
0x273b   :  { %v1979_v2 = vadd.f32 1.0, %v2709_v0 }
0x273d   :  { %2710 = vrcp.f32 %v1979_v2 }
0x274a   :  { %v2711_v5 = vpop.eup %2710 }
0x274b   :  { %v1983_v58 = vmul.f32 %v2711_v5, %v1893_v49 }
0x27ab   :  { %v1986_v6 = vpop.permute.xlu0 %1985 }
0x27ac   :  { %v1988_v8 = vmul.f32 %v2711_v5, %v1986_v6 }
0x27ae   :  { %1990 = vrot.lane.b32.xlu1 %v1988_v8, %s2809_s3 }
0x2820   :  { %v1991_v9 = vpop.permute.xlu1 %1990 }
0x2821   :  { %v1993_v7 = vadd.f32 %v1991_v9, %v1983_v58 }
0x2823   :  { %2712 = vtanh.f32 %v1993_v7 }
0x2830   :  { %v2713_v3 = vpop.eup %2712 }
0x2831   :  { %1996 = vrot.lane.b32.xlu0 %v2713_v3, %s2808_s29 }
0x28a3   :  { %v1997_v10 = vpop.permute.xlu0 %1996 }
0x28a4   :  { %v1999_v12 = vmul.f32 %v2711_v5, %v1997_v10 }
0x28a6   :  { %2012 = vrot.lane.b32.xlu1 %v1999_v12, %s2809_s3 }
0x2918   :  { %v2013_v59 = vpop.permute.xlu1 %2012 }
0x2919   :  { %2563 = vmatmul.mubr.msk.f32.gmra.mxu0 %vm281_vm9, %v2013_v59 }
0x29d9   :  { %v2564_v14 = vpop.f32.mrf.mxu0 }
0x29da   :  { %v2118_v60 = vadd.f32 %v2564_v14, %v3304_v62 }
0x29db   :  { %v2112_v33 = vpop.f32.mrf.mxu0 }
0x29dc   :  { %2128 = vst [vmem:[#allocation8 + $0x38] sm:$0xff] %v2118_v60  ;;  %v2113_v11 = vadd.f32 %v3304_v62, %v2112_v33 }
0x29de   :  { %2127 = vst [vmem:[#allocation8 + $0x30] sm:$0xff] %v2113_v11 }
0x29df   :  { %2785 = shalt.err (!%p2782_p5)
}
0x29e0   :  { %2140 = dma.vmem_to_hbm [thread:$0]  %s2135_s17, 1024, %s3342_s9, [#allocation4], %s2802_s14, %s2802_s14, %s2803_s15  }
0x29e1   :  { %2798 = dma.done.wait [#allocation4], 1024  }
0x29e2   :  { %2799 = vsyncadd [#allocation4], 4294966272 }
0x29e3   :  { %2144 = vsyncpa [#allocation3], 1 }
0x29e4   :  { %2145 = vsyncpa [#allocation6], 1 }
0x29e5   :  { %2146 = vsyncpa [#allocation4], 1 }

</bundles_post_ra>
